<compile_context>
chip_gen: v7x
topology: tpu7x:2x2x1
jax: 0.10.0
libtpu: 0.0.40
codegen_flags: <defaults>
</compile_context>

<pallas_src>
import jax
import jax.numpy as jnp
import numpy as np
from jax.experimental import pallas as pl
from jax.experimental.pallas import tpu as pltpu


def btc_kernel(x_ref, w_ih_ref, w_hh_ref, b_ref, w_fc_ref, b_fc_ref,
               h0_ref, c0_ref, out_ref, gx_scr, h_all_scr):
    Bp, H = h0_ref.shape
    T = x_ref.shape[0] // Bp

    # Input projection for ALL timesteps at once, bias folded in.
    # This removes x@W_ih^T (and the bias broadcast) from the serial h->h path.
    gx_scr[...] = (
        jnp.dot(x_ref[...], w_ih_ref[...], preferred_element_type=jnp.float32)
        + b_ref[...])

    w_hh = w_hh_ref[...]          # hoisted: loaded once, reused every step
    h = h0_ref[...]               # (Bp, H) recurrent state lives in vregs
    c = c0_ref[...]

    # Fully-unrolled time recurrence (T is small and static); only the
    # recurrent h @ W_hh^T matmul sits on the serial critical path.
    for t in range(T):
        gates = (gx_scr[pl.ds(t * Bp, Bp), :]
                 + jnp.dot(h, w_hh, preferred_element_type=jnp.float32))
        # PyTorch gate order: i, f, g, o
        i_g = jax.nn.sigmoid(gates[:, 0 * H:1 * H])
        f_g = jax.nn.sigmoid(gates[:, 1 * H:2 * H])
        g_g = jnp.tanh(gates[:, 2 * H:3 * H])
        o_g = jax.nn.sigmoid(gates[:, 3 * H:4 * H])
        c = f_g * c + i_g * g_g
        h = o_g * jnp.tanh(c)
        h_all_scr[pl.ds(t * Bp, Bp), :] = h   # tile-aligned static slice

    # Single fc1 + ReLU epilogue over all timesteps; one lane-dense store
    # (output width padded to a multiple of 128 lanes -> unmasked vst).
    lin = (jnp.dot(h_all_scr[...], w_fc_ref[...],
                   preferred_element_type=jnp.float32) + b_fc_ref[...])
    out_ref[...] = jnp.maximum(lin, 0.0)


def btcnet_forward(x, w_ih, w_hh, b_ih, b_hh, w_fc, b_fc, h0, c0):
    """x: (T, B, I) float32. Returns ReLU(Linear(LSTM(x))) of shape (T, B, O)."""
    T, B, I = x.shape
    H = w_hh.shape[1]
    O = w_fc.shape[0]

    Bp = ((B + 7) // 8) * 8          # sublane-aligned batch (10 -> 16)
    Op = ((O + 127) // 128) * 128    # lane-dense output width (16 -> 128)

    # Wrapper-side glue (plain JAX): pad / transpose so the kernel does only
    # aligned, lane-dense matmuls. Padded batch rows start from zero state and
    # never interact with real rows; padded output columns are sliced away.
    x_p = jnp.pad(x.astype(jnp.float32),
                  ((0, 0), (0, Bp - B), (0, 0))).reshape(T * Bp, I)
    h0_p = jnp.pad(h0.astype(jnp.float32), ((0, Bp - B), (0, 0)))
    c0_p = jnp.pad(c0.astype(jnp.float32), ((0, Bp - B), (0, 0)))

    w_ih_t = jnp.asarray(w_ih, jnp.float32).T                    # (I, 4H)
    w_hh_t = jnp.asarray(w_hh, jnp.float32).T                    # (H, 4H)
    b = (b_ih + b_hh).astype(jnp.float32)[None, :]               # (1, 4H)
    w_fc_t = jnp.pad(jnp.asarray(w_fc, jnp.float32).T,
                     ((0, 0), (0, Op - O)))                      # (H, Op)
    b_fc_p = jnp.pad(jnp.asarray(b_fc, jnp.float32),
                     (0, Op - O))[None, :]                       # (1, Op)

    out_pad = pl.pallas_call(
        btc_kernel,
        out_shape=jax.ShapeDtypeStruct((T * Bp, Op), jnp.float32),
        grid_spec=pltpu.PrefetchScalarGridSpec(
            num_scalar_prefetch=0,
            grid=(1,),   # single invocation; the recurrence is in-kernel
            in_specs=[
                pl.BlockSpec((T * Bp, I), lambda i: (0, 0)),     # x, all steps
                pl.BlockSpec((I, 4 * H), lambda i: (0, 0)),      # W_ih^T
                pl.BlockSpec((H, 4 * H), lambda i: (0, 0)),      # W_hh^T
                pl.BlockSpec((1, 4 * H), lambda i: (0, 0)),      # b_ih + b_hh
                pl.BlockSpec((H, Op), lambda i: (0, 0)),         # W_fc^T (padded)
                pl.BlockSpec((1, Op), lambda i: (0, 0)),         # b_fc (padded)
                pl.BlockSpec((Bp, H), lambda i: (0, 0)),         # h0
                pl.BlockSpec((Bp, H), lambda i: (0, 0)),         # c0
            ],
            out_specs=pl.BlockSpec((T * Bp, Op), lambda i: (0, 0)),
            scratch_shapes=[
                pltpu.VMEM((T * Bp, 4 * H), jnp.float32),   # gates_x (hoisted)
                pltpu.VMEM((T * Bp, H), jnp.float32),       # h history
            ],
        ),
        compiler_params=pltpu.CompilerParams(
            dimension_semantics=("arbitrary",)),
    )(x_p, w_ih_t, w_hh_t, b, w_fc_t, b_fc_p, h0_p, c0_p)

    return out_pad.reshape(T, Bp, Op)[:, :B, :O]


def _reference(x, w_ih, w_hh, b_ih, b_hh, w_fc, b_fc, h0, c0):
    """Pure-JAX reference of the PyTorch forward."""
    H = w_hh.shape[1]

    def step(carry, x_t):
        h, c = carry
        gates = x_t @ w_ih.T + h @ w_hh.T + b_ih + b_hh
        i = jax.nn.sigmoid(gates[:, 0 * H:1 * H])
        f = jax.nn.sigmoid(gates[:, 1 * H:2 * H])
        g = jnp.tanh(gates[:, 2 * H:3 * H])
        o = jax.nn.sigmoid(gates[:, 3 * H:4 * H])
        c = f * c + i * g
        h = o * jnp.tanh(c)
        return (h, c), h

    (_, _), hs = jax.lax.scan(step, (h0, c0), x)
    lin = hs @ w_fc.T + b_fc
    return jnp.maximum(lin, 0.0)


if __name__ == "__main__":
    # Shapes consistent with the module:
    #   batch_size = 10 (module global), seq = 8, input_size = 8,
    #   hidden_size = 32, output_size = 16
    T, B, I, H, O = 8, 10, 8, 32, 16

    key = jax.random.PRNGKey(0)
    k = jax.random.split(key, 7)
    s = 1.0 / np.sqrt(H)
    w_ih = jax.random.uniform(k[0], (4 * H, I), jnp.float32, -s, s)
    w_hh = jax.random.uniform(k[1], (4 * H, H), jnp.float32, -s, s)
    b_ih = jax.random.uniform(k[2], (4 * H,), jnp.float32, -s, s)
    b_hh = jax.random.uniform(k[3], (4 * H,), jnp.float32, -s, s)
    w_fc = jax.random.uniform(k[4], (O, H), jnp.float32, -s, s)
    b_fc = jax.random.uniform(k[5], (O,), jnp.float32, -s, s)
    x = jax.random.normal(k[6], (T, B, I), jnp.float32)

    # module's self.hidden = (zeros(1, batch, hidden), zeros(1, batch, hidden))
    h0 = jnp.zeros((B, H), jnp.float32)
    c0 = jnp.zeros((B, H), jnp.float32)

    out = btcnet_forward(x, w_ih, w_hh, b_ih, b_hh, w_fc, b_fc, h0, c0)
    out = jax.block_until_ready(out)

    ref = _reference(x, w_ih, w_hh, b_ih, b_hh, w_fc, b_fc, h0, c0)
    np.testing.assert_allclose(np.asarray(out), np.asarray(ref),
                               rtol=1e-5, atol=1e-5)

    print("KERNEL_OK")
</pallas_src>

<mosaic_0001>
module attributes {stable_mosaic.version = 11 : i64} {
  func.func @btc_kernel(%arg0: i32, %arg1: memref<128x8xf32, #tpu.memory_space<vmem>>, %arg2: memref<8x128xf32, #tpu.memory_space<vmem>>, %arg3: memref<32x128xf32, #tpu.memory_space<vmem>>, %arg4: memref<1x128xf32, #tpu.memory_space<vmem>>, %arg5: memref<32x128xf32, #tpu.memory_space<vmem>>, %arg6: memref<1x128xf32, #tpu.memory_space<vmem>>, %arg7: memref<16x32xf32, #tpu.memory_space<vmem>>, %arg8: memref<16x32xf32, #tpu.memory_space<vmem>>, %arg9: memref<128x128xf32, #tpu.memory_space<vmem>>, %arg10: memref<128x128xf32, #tpu.memory_space<vmem>>, %arg11: memref<128x32xf32, #tpu.memory_space<vmem>>) attributes {dimension_semantics = [#tpu.dimension_semantics<arbitrary>], iteration_bounds = array<i64: 1>, scalar_prefetch = 0 : i64, scratch_operands = 2 : i64, tpu.core_type = #tpu.core_type<tc>, window_params = [{pipeline_mode = #tpu.pipeline_mode<synchronous>, transform_indices = @transform_0, window_bounds = array<i64: 128, 8>}, {pipeline_mode = #tpu.pipeline_mode<synchronous>, transform_indices = @transform_1, window_bounds = array<i64: 8, 128>}, {pipeline_mode = #tpu.pipeline_mode<synchronous>, transform_indices = @transform_2, window_bounds = array<i64: 32, 128>}, {pipeline_mode = #tpu.pipeline_mode<synchronous>, transform_indices = @transform_3, window_bounds = array<i64: 1, 128>}, {pipeline_mode = #tpu.pipeline_mode<synchronous>, transform_indices = @transform_4, window_bounds = array<i64: 32, 128>}, {pipeline_mode = #tpu.pipeline_mode<synchronous>, transform_indices = @transform_5, window_bounds = array<i64: 1, 128>}, {pipeline_mode = #tpu.pipeline_mode<synchronous>, transform_indices = @transform_6, window_bounds = array<i64: 16, 32>}, {pipeline_mode = #tpu.pipeline_mode<synchronous>, transform_indices = @transform_7, window_bounds = array<i64: 16, 32>}, {pipeline_mode = #tpu.pipeline_mode<synchronous>, transform_indices = @transform_8, window_bounds = array<i64: 128, 128>}]} {
    %c0 = arith.constant 0 : index
    %c0_0 = arith.constant 0 : index
    %0 = vector.load %arg1[%c0, %c0_0] : memref<128x8xf32, #tpu.memory_space<vmem>>, vector<128x8xf32>
    %c0_1 = arith.constant 0 : index
    %c0_2 = arith.constant 0 : index
    %1 = vector.load %arg2[%c0_1, %c0_2] : memref<8x128xf32, #tpu.memory_space<vmem>>, vector<8x128xf32>
    %cst = arith.constant dense<0.000000e+00> : vector<128x128xf32>
    %2 = tpu.matmul %0, %1, %cst {dimension_numbers = #tpu.dot_dimension_numbers<[1], [0], [0], [1], [0, 0, 1, 1], [], []>} : vector<128x8xf32>, vector<8x128xf32>, vector<128x128xf32> -> vector<128x128xf32>
    %c0_3 = arith.constant 0 : index
    %c0_4 = arith.constant 0 : index
    %3 = vector.load %arg4[%c0_3, %c0_4] : memref<1x128xf32, #tpu.memory_space<vmem>>, vector<1x128xf32>
    %4 = vector.broadcast %3 : vector<1x128xf32> to vector<128x128xf32>
    %5 = arith.addf %2, %4 : vector<128x128xf32>
    %c0_5 = arith.constant 0 : index
    %c0_6 = arith.constant 0 : index
    %6 = vector.load %arg10[%c0_5, %c0_6] : memref<128x128xf32, #tpu.memory_space<vmem>>, vector<128x128xf32>
    tpu.vector_store %arg10[%c0_5, %c0_6], %5 {strides = array<i32>} : memref<128x128xf32, #tpu.memory_space<vmem>>, vector<128x128xf32>,
    %c0_7 = arith.constant 0 : index
    %c0_8 = arith.constant 0 : index
    %7 = vector.load %arg3[%c0_7, %c0_8] : memref<32x128xf32, #tpu.memory_space<vmem>>, vector<32x128xf32>
    %c0_9 = arith.constant 0 : index
    %c0_10 = arith.constant 0 : index
    %8 = vector.load %arg7[%c0_9, %c0_10] : memref<16x32xf32, #tpu.memory_space<vmem>>, vector<16x32xf32>
    %c0_11 = arith.constant 0 : index
    %c0_12 = arith.constant 0 : index
    %9 = vector.load %arg8[%c0_11, %c0_12] : memref<16x32xf32, #tpu.memory_space<vmem>>, vector<16x32xf32>
    %c0_13 = arith.constant 0 : index
    %c0_14 = arith.constant 0 : index
    %10 = vector.load %arg10[%c0_13, %c0_14] : memref<128x128xf32, #tpu.memory_space<vmem>>, vector<16x128xf32>
    %cst_15 = arith.constant dense<0.000000e+00> : vector<16x128xf32>
    %11 = tpu.matmul %8, %7, %cst_15 {dimension_numbers = #tpu.dot_dimension_numbers<[1], [0], [0], [1], [0, 0, 1, 1], [], []>} : vector<16x32xf32>, vector<32x128xf32>, vector<16x128xf32> -> vector<16x128xf32>
    %12 = arith.addf %10, %11 : vector<16x128xf32>
    %13 = vector.extract_strided_slice %12 {offsets = [0, 0], sizes = [16, 32], strides = [1, 1]} : vector<16x128xf32> to vector<16x32xf32>
    %14 = arith.negf %13 : vector<16x32xf32>
    %15 = math.exp %14 : vector<16x32xf32>
    %cst_16 = arith.constant 1.000000e+00 : f32
    %16 = vector.broadcast %cst_16 : f32 to vector<16x32xf32>
    %17 = arith.addf %16, %15 : vector<16x32xf32>
    %18 = arith.divf %16, %17 : vector<16x32xf32>
    %19 = vector.extract_strided_slice %12 {offsets = [0, 32], sizes = [16, 32], strides = [1, 1]} : vector<16x128xf32> to vector<16x32xf32>
    %20 = arith.negf %19 : vector<16x32xf32>
    %21 = math.exp %20 : vector<16x32xf32>
    %cst_17 = arith.constant 1.000000e+00 : f32
    %22 = vector.broadcast %cst_17 : f32 to vector<16x32xf32>
    %23 = arith.addf %22, %21 : vector<16x32xf32>
    %24 = arith.divf %22, %23 : vector<16x32xf32>
    %25 = vector.extract_strided_slice %12 {offsets = [0, 64], sizes = [16, 32], strides = [1, 1]} : vector<16x128xf32> to vector<16x32xf32>
    %26 = math.tanh %25 : vector<16x32xf32>
    %27 = vector.extract_strided_slice %12 {offsets = [0, 96], sizes = [16, 32], strides = [1, 1]} : vector<16x128xf32> to vector<16x32xf32>
    %28 = arith.negf %27 : vector<16x32xf32>
    %29 = math.exp %28 : vector<16x32xf32>
    %cst_18 = arith.constant 1.000000e+00 : f32
    %30 = vector.broadcast %cst_18 : f32 to vector<16x32xf32>
    %31 = arith.addf %30, %29 : vector<16x32xf32>
    %32 = arith.divf %30, %31 : vector<16x32xf32>
    %33 = arith.mulf %24, %9 : vector<16x32xf32>
    %34 = arith.mulf %18, %26 : vector<16x32xf32>
    %35 = arith.addf %33, %34 : vector<16x32xf32>
    %36 = math.tanh %35 : vector<16x32xf32>
    %37 = arith.mulf %32, %36 : vector<16x32xf32>
    %c0_19 = arith.constant 0 : index
    %c0_20 = arith.constant 0 : index
    %38 = vector.load %arg11[%c0_19, %c0_20] : memref<128x32xf32, #tpu.memory_space<vmem>>, vector<16x32xf32>
    tpu.vector_store %arg11[%c0_19, %c0_20], %37 {strides = array<i32>} : memref<128x32xf32, #tpu.memory_space<vmem>>, vector<16x32xf32>,
    %c16 = arith.constant 16 : index
    %c0_21 = arith.constant 0 : index
    %39 = vector.load %arg10[%c16, %c0_21] : memref<128x128xf32, #tpu.memory_space<vmem>>, vector<16x128xf32>
    %cst_22 = arith.constant dense<0.000000e+00> : vector<16x128xf32>
    %40 = tpu.matmul %37, %7, %cst_22 {dimension_numbers = #tpu.dot_dimension_numbers<[1], [0], [0], [1], [0, 0, 1, 1], [], []>} : vector<16x32xf32>, vector<32x128xf32>, vector<16x128xf32> -> vector<16x128xf32>
    %41 = arith.addf %39, %40 : vector<16x128xf32>
    %42 = vector.extract_strided_slice %41 {offsets = [0, 0], sizes = [16, 32], strides = [1, 1]} : vector<16x128xf32> to vector<16x32xf32>
    %43 = arith.negf %42 : vector<16x32xf32>
    %44 = math.exp %43 : vector<16x32xf32>
    %cst_23 = arith.constant 1.000000e+00 : f32
    %45 = vector.broadcast %cst_23 : f32 to vector<16x32xf32>
    %46 = arith.addf %45, %44 : vector<16x32xf32>
    %47 = arith.divf %45, %46 : vector<16x32xf32>
    %48 = vector.extract_strided_slice %41 {offsets = [0, 32], sizes = [16, 32], strides = [1, 1]} : vector<16x128xf32> to vector<16x32xf32>
    %49 = arith.negf %48 : vector<16x32xf32>
    %50 = math.exp %49 : vector<16x32xf32>
    %cst_24 = arith.constant 1.000000e+00 : f32
    %51 = vector.broadcast %cst_24 : f32 to vector<16x32xf32>
    %52 = arith.addf %51, %50 : vector<16x32xf32>
    %53 = arith.divf %51, %52 : vector<16x32xf32>
    %54 = vector.extract_strided_slice %41 {offsets = [0, 64], sizes = [16, 32], strides = [1, 1]} : vector<16x128xf32> to vector<16x32xf32>
    %55 = math.tanh %54 : vector<16x32xf32>
    %56 = vector.extract_strided_slice %41 {offsets = [0, 96], sizes = [16, 32], strides = [1, 1]} : vector<16x128xf32> to vector<16x32xf32>
    %57 = arith.negf %56 : vector<16x32xf32>
    %58 = math.exp %57 : vector<16x32xf32>
    %cst_25 = arith.constant 1.000000e+00 : f32
    %59 = vector.broadcast %cst_25 : f32 to vector<16x32xf32>
    %60 = arith.addf %59, %58 : vector<16x32xf32>
    %61 = arith.divf %59, %60 : vector<16x32xf32>
    %62 = arith.mulf %53, %35 : vector<16x32xf32>
    %63 = arith.mulf %47, %55 : vector<16x32xf32>
    %64 = arith.addf %62, %63 : vector<16x32xf32>
    %65 = math.tanh %64 : vector<16x32xf32>
    %66 = arith.mulf %61, %65 : vector<16x32xf32>
    %c16_26 = arith.constant 16 : index
    %c0_27 = arith.constant 0 : index
    %67 = vector.load %arg11[%c16_26, %c0_27] : memref<128x32xf32, #tpu.memory_space<vmem>>, vector<16x32xf32>
    tpu.vector_store %arg11[%c16_26, %c0_27], %66 {strides = array<i32>} : memref<128x32xf32, #tpu.memory_space<vmem>>, vector<16x32xf32>,
    %c32 = arith.constant 32 : index
    %c0_28 = arith.constant 0 : index
    %68 = vector.load %arg10[%c32, %c0_28] : memref<128x128xf32, #tpu.memory_space<vmem>>, vector<16x128xf32>
    %cst_29 = arith.constant dense<0.000000e+00> : vector<16x128xf32>
    %69 = tpu.matmul %66, %7, %cst_29 {dimension_numbers = #tpu.dot_dimension_numbers<[1], [0], [0], [1], [0, 0, 1, 1], [], []>} : vector<16x32xf32>, vector<32x128xf32>, vector<16x128xf32> -> vector<16x128xf32>
    %70 = arith.addf %68, %69 : vector<16x128xf32>
    %71 = vector.extract_strided_slice %70 {offsets = [0, 0], sizes = [16, 32], strides = [1, 1]} : vector<16x128xf32> to vector<16x32xf32>
    %72 = arith.negf %71 : vector<16x32xf32>
    %73 = math.exp %72 : vector<16x32xf32>
    %cst_30 = arith.constant 1.000000e+00 : f32
    %74 = vector.broadcast %cst_30 : f32 to vector<16x32xf32>
    %75 = arith.addf %74, %73 : vector<16x32xf32>
    %76 = arith.divf %74, %75 : vector<16x32xf32>
    %77 = vector.extract_strided_slice %70 {offsets = [0, 32], sizes = [16, 32], strides = [1, 1]} : vector<16x128xf32> to vector<16x32xf32>
    %78 = arith.negf %77 : vector<16x32xf32>
    %79 = math.exp %78 : vector<16x32xf32>
    %cst_31 = arith.constant 1.000000e+00 : f32
    %80 = vector.broadcast %cst_31 : f32 to vector<16x32xf32>
    %81 = arith.addf %80, %79 : vector<16x32xf32>
    %82 = arith.divf %80, %81 : vector<16x32xf32>
    %83 = vector.extract_strided_slice %70 {offsets = [0, 64], sizes = [16, 32], strides = [1, 1]} : vector<16x128xf32> to vector<16x32xf32>
    %84 = math.tanh %83 : vector<16x32xf32>
    %85 = vector.extract_strided_slice %70 {offsets = [0, 96], sizes = [16, 32], strides = [1, 1]} : vector<16x128xf32> to vector<16x32xf32>
    %86 = arith.negf %85 : vector<16x32xf32>
    %87 = math.exp %86 : vector<16x32xf32>
    %cst_32 = arith.constant 1.000000e+00 : f32
    %88 = vector.broadcast %cst_32 : f32 to vector<16x32xf32>
    %89 = arith.addf %88, %87 : vector<16x32xf32>
    %90 = arith.divf %88, %89 : vector<16x32xf32>
    %91 = arith.mulf %82, %64 : vector<16x32xf32>
    %92 = arith.mulf %76, %84 : vector<16x32xf32>
    %93 = arith.addf %91, %92 : vector<16x32xf32>
    %94 = math.tanh %93 : vector<16x32xf32>
    %95 = arith.mulf %90, %94 : vector<16x32xf32>
    %c32_33 = arith.constant 32 : index
    %c0_34 = arith.constant 0 : index
    %96 = vector.load %arg11[%c32_33, %c0_34] : memref<128x32xf32, #tpu.memory_space<vmem>>, vector<16x32xf32>
    tpu.vector_store %arg11[%c32_33, %c0_34], %95 {strides = array<i32>} : memref<128x32xf32, #tpu.memory_space<vmem>>, vector<16x32xf32>,
    %c48 = arith.constant 48 : index
    %c0_35 = arith.constant 0 : index
    %97 = vector.load %arg10[%c48, %c0_35] : memref<128x128xf32, #tpu.memory_space<vmem>>, vector<16x128xf32>
    %cst_36 = arith.constant dense<0.000000e+00> : vector<16x128xf32>
    %98 = tpu.matmul %95, %7, %cst_36 {dimension_numbers = #tpu.dot_dimension_numbers<[1], [0], [0], [1], [0, 0, 1, 1], [], []>} : vector<16x32xf32>, vector<32x128xf32>, vector<16x128xf32> -> vector<16x128xf32>
    %99 = arith.addf %97, %98 : vector<16x128xf32>
    %100 = vector.extract_strided_slice %99 {offsets = [0, 0], sizes = [16, 32], strides = [1, 1]} : vector<16x128xf32> to vector<16x32xf32>
    %101 = arith.negf %100 : vector<16x32xf32>
    %102 = math.exp %101 : vector<16x32xf32>
    %cst_37 = arith.constant 1.000000e+00 : f32
    %103 = vector.broadcast %cst_37 : f32 to vector<16x32xf32>
    %104 = arith.addf %103, %102 : vector<16x32xf32>
    %105 = arith.divf %103, %104 : vector<16x32xf32>
    %106 = vector.extract_strided_slice %99 {offsets = [0, 32], sizes = [16, 32], strides = [1, 1]} : vector<16x128xf32> to vector<16x32xf32>
    %107 = arith.negf %106 : vector<16x32xf32>
    %108 = math.exp %107 : vector<16x32xf32>
    %cst_38 = arith.constant 1.000000e+00 : f32
    %109 = vector.broadcast %cst_38 : f32 to vector<16x32xf32>
    %110 = arith.addf %109, %108 : vector<16x32xf32>
    %111 = arith.divf %109, %110 : vector<16x32xf32>
    %112 = vector.extract_strided_slice %99 {offsets = [0, 64], sizes = [16, 32], strides = [1, 1]} : vector<16x128xf32> to vector<16x32xf32>
    %113 = math.tanh %112 : vector<16x32xf32>
    %114 = vector.extract_strided_slice %99 {offsets = [0, 96], sizes = [16, 32], strides = [1, 1]} : vector<16x128xf32> to vector<16x32xf32>
    %115 = arith.negf %114 : vector<16x32xf32>
    %116 = math.exp %115 : vector<16x32xf32>
    %cst_39 = arith.constant 1.000000e+00 : f32
    %117 = vector.broadcast %cst_39 : f32 to vector<16x32xf32>
    %118 = arith.addf %117, %116 : vector<16x32xf32>
    %119 = arith.divf %117, %118 : vector<16x32xf32>
    %120 = arith.mulf %111, %93 : vector<16x32xf32>
    %121 = arith.mulf %105, %113 : vector<16x32xf32>
    %122 = arith.addf %120, %121 : vector<16x32xf32>
    %123 = math.tanh %122 : vector<16x32xf32>
    %124 = arith.mulf %119, %123 : vector<16x32xf32>
    %c48_40 = arith.constant 48 : index
    %c0_41 = arith.constant 0 : index
    %125 = vector.load %arg11[%c48_40, %c0_41] : memref<128x32xf32, #tpu.memory_space<vmem>>, vector<16x32xf32>
    tpu.vector_store %arg11[%c48_40, %c0_41], %124 {strides = array<i32>} : memref<128x32xf32, #tpu.memory_space<vmem>>, vector<16x32xf32>,
    %c64 = arith.constant 64 : index
    %c0_42 = arith.constant 0 : index
    %126 = vector.load %arg10[%c64, %c0_42] : memref<128x128xf32, #tpu.memory_space<vmem>>, vector<16x128xf32>
    %cst_43 = arith.constant dense<0.000000e+00> : vector<16x128xf32>
    %127 = tpu.matmul %124, %7, %cst_43 {dimension_numbers = #tpu.dot_dimension_numbers<[1], [0], [0], [1], [0, 0, 1, 1], [], []>} : vector<16x32xf32>, vector<32x128xf32>, vector<16x128xf32> -> vector<16x128xf32>
    %128 = arith.addf %126, %127 : vector<16x128xf32>
    %129 = vector.extract_strided_slice %128 {offsets = [0, 0], sizes = [16, 32], strides = [1, 1]} : vector<16x128xf32> to vector<16x32xf32>
    %130 = arith.negf %129 : vector<16x32xf32>
    %131 = math.exp %130 : vector<16x32xf32>
    %cst_44 = arith.constant 1.000000e+00 : f32
    %132 = vector.broadcast %cst_44 : f32 to vector<16x32xf32>
    %133 = arith.addf %132, %131 : vector<16x32xf32>
    %134 = arith.divf %132, %133 : vector<16x32xf32>
    %135 = vector.extract_strided_slice %128 {offsets = [0, 32], sizes = [16, 32], strides = [1, 1]} : vector<16x128xf32> to vector<16x32xf32>
    %136 = arith.negf %135 : vector<16x32xf32>
    %137 = math.exp %136 : vector<16x32xf32>
    %cst_45 = arith.constant 1.000000e+00 : f32
    %138 = vector.broadcast %cst_45 : f32 to vector<16x32xf32>
    %139 = arith.addf %138, %137 : vector<16x32xf32>
    %140 = arith.divf %138, %139 : vector<16x32xf32>
    %141 = vector.extract_strided_slice %128 {offsets = [0, 64], sizes = [16, 32], strides = [1, 1]} : vector<16x128xf32> to vector<16x32xf32>
    %142 = math.tanh %141 : vector<16x32xf32>
    %143 = vector.extract_strided_slice %128 {offsets = [0, 96], sizes = [16, 32], strides = [1, 1]} : vector<16x128xf32> to vector<16x32xf32>
    %144 = arith.negf %143 : vector<16x32xf32>
    %145 = math.exp %144 : vector<16x32xf32>
    %cst_46 = arith.constant 1.000000e+00 : f32
    %146 = vector.broadcast %cst_46 : f32 to vector<16x32xf32>
    %147 = arith.addf %146, %145 : vector<16x32xf32>
    %148 = arith.divf %146, %147 : vector<16x32xf32>
    %149 = arith.mulf %140, %122 : vector<16x32xf32>
    %150 = arith.mulf %134, %142 : vector<16x32xf32>
    %151 = arith.addf %149, %150 : vector<16x32xf32>
    %152 = math.tanh %151 : vector<16x32xf32>
    %153 = arith.mulf %148, %152 : vector<16x32xf32>
    %c64_47 = arith.constant 64 : index
    %c0_48 = arith.constant 0 : index
    %154 = vector.load %arg11[%c64_47, %c0_48] : memref<128x32xf32, #tpu.memory_space<vmem>>, vector<16x32xf32>
    tpu.vector_store %arg11[%c64_47, %c0_48], %153 {strides = array<i32>} : memref<128x32xf32, #tpu.memory_space<vmem>>, vector<16x32xf32>,
    %c80 = arith.constant 80 : index
    %c0_49 = arith.constant 0 : index
    %155 = vector.load %arg10[%c80, %c0_49] : memref<128x128xf32, #tpu.memory_space<vmem>>, vector<16x128xf32>
    %cst_50 = arith.constant dense<0.000000e+00> : vector<16x128xf32>
    %156 = tpu.matmul %153, %7, %cst_50 {dimension_numbers = #tpu.dot_dimension_numbers<[1], [0], [0], [1], [0, 0, 1, 1], [], []>} : vector<16x32xf32>, vector<32x128xf32>, vector<16x128xf32> -> vector<16x128xf32>
    %157 = arith.addf %155, %156 : vector<16x128xf32>
    %158 = vector.extract_strided_slice %157 {offsets = [0, 0], sizes = [16, 32], strides = [1, 1]} : vector<16x128xf32> to vector<16x32xf32>
    %159 = arith.negf %158 : vector<16x32xf32>
    %160 = math.exp %159 : vector<16x32xf32>
    %cst_51 = arith.constant 1.000000e+00 : f32
    %161 = vector.broadcast %cst_51 : f32 to vector<16x32xf32>
    %162 = arith.addf %161, %160 : vector<16x32xf32>
    %163 = arith.divf %161, %162 : vector<16x32xf32>
    %164 = vector.extract_strided_slice %157 {offsets = [0, 32], sizes = [16, 32], strides = [1, 1]} : vector<16x128xf32> to vector<16x32xf32>
    %165 = arith.negf %164 : vector<16x32xf32>
    %166 = math.exp %165 : vector<16x32xf32>
    %cst_52 = arith.constant 1.000000e+00 : f32
    %167 = vector.broadcast %cst_52 : f32 to vector<16x32xf32>
    %168 = arith.addf %167, %166 : vector<16x32xf32>
    %169 = arith.divf %167, %168 : vector<16x32xf32>
    %170 = vector.extract_strided_slice %157 {offsets = [0, 64], sizes = [16, 32], strides = [1, 1]} : vector<16x128xf32> to vector<16x32xf32>
    %171 = math.tanh %170 : vector<16x32xf32>
    %172 = vector.extract_strided_slice %157 {offsets = [0, 96], sizes = [16, 32], strides = [1, 1]} : vector<16x128xf32> to vector<16x32xf32>
    %173 = arith.negf %172 : vector<16x32xf32>
    %174 = math.exp %173 : vector<16x32xf32>
    %cst_53 = arith.constant 1.000000e+00 : f32
    %175 = vector.broadcast %cst_53 : f32 to vector<16x32xf32>
    %176 = arith.addf %175, %174 : vector<16x32xf32>
    %177 = arith.divf %175, %176 : vector<16x32xf32>
    %178 = arith.mulf %169, %151 : vector<16x32xf32>
    %179 = arith.mulf %163, %171 : vector<16x32xf32>
    %180 = arith.addf %178, %179 : vector<16x32xf32>
    %181 = math.tanh %180 : vector<16x32xf32>
    %182 = arith.mulf %177, %181 : vector<16x32xf32>
    %c80_54 = arith.constant 80 : index
    %c0_55 = arith.constant 0 : index
    %183 = vector.load %arg11[%c80_54, %c0_55] : memref<128x32xf32, #tpu.memory_space<vmem>>, vector<16x32xf32>
    tpu.vector_store %arg11[%c80_54, %c0_55], %182 {strides = array<i32>} : memref<128x32xf32, #tpu.memory_space<vmem>>, vector<16x32xf32>,
    %c96 = arith.constant 96 : index
    %c0_56 = arith.constant 0 : index
    %184 = vector.load %arg10[%c96, %c0_56] : memref<128x128xf32, #tpu.memory_space<vmem>>, vector<16x128xf32>
    %cst_57 = arith.constant dense<0.000000e+00> : vector<16x128xf32>
    %185 = tpu.matmul %182, %7, %cst_57 {dimension_numbers = #tpu.dot_dimension_numbers<[1], [0], [0], [1], [0, 0, 1, 1], [], []>} : vector<16x32xf32>, vector<32x128xf32>, vector<16x128xf32> -> vector<16x128xf32>
    %186 = arith.addf %184, %185 : vector<16x128xf32>
    %187 = vector.extract_strided_slice %186 {offsets = [0, 0], sizes = [16, 32], strides = [1, 1]} : vector<16x128xf32> to vector<16x32xf32>
    %188 = arith.negf %187 : vector<16x32xf32>
    %189 = math.exp %188 : vector<16x32xf32>
    %cst_58 = arith.constant 1.000000e+00 : f32
    %190 = vector.broadcast %cst_58 : f32 to vector<16x32xf32>
    %191 = arith.addf %190, %189 : vector<16x32xf32>
    %192 = arith.divf %190, %191 : vector<16x32xf32>
    %193 = vector.extract_strided_slice %186 {offsets = [0, 32], sizes = [16, 32], strides = [1, 1]} : vector<16x128xf32> to vector<16x32xf32>
    %194 = arith.negf %193 : vector<16x32xf32>
    %195 = math.exp %194 : vector<16x32xf32>
    %cst_59 = arith.constant 1.000000e+00 : f32
    %196 = vector.broadcast %cst_59 : f32 to vector<16x32xf32>
    %197 = arith.addf %196, %195 : vector<16x32xf32>
    %198 = arith.divf %196, %197 : vector<16x32xf32>
    %199 = vector.extract_strided_slice %186 {offsets = [0, 64], sizes = [16, 32], strides = [1, 1]} : vector<16x128xf32> to vector<16x32xf32>
    %200 = math.tanh %199 : vector<16x32xf32>
    %201 = vector.extract_strided_slice %186 {offsets = [0, 96], sizes = [16, 32], strides = [1, 1]} : vector<16x128xf32> to vector<16x32xf32>
    %202 = arith.negf %201 : vector<16x32xf32>
    %203 = math.exp %202 : vector<16x32xf32>
    %cst_60 = arith.constant 1.000000e+00 : f32
    %204 = vector.broadcast %cst_60 : f32 to vector<16x32xf32>
    %205 = arith.addf %204, %203 : vector<16x32xf32>
    %206 = arith.divf %204, %205 : vector<16x32xf32>
    %207 = arith.mulf %198, %180 : vector<16x32xf32>
    %208 = arith.mulf %192, %200 : vector<16x32xf32>
    %209 = arith.addf %207, %208 : vector<16x32xf32>
    %210 = math.tanh %209 : vector<16x32xf32>
    %211 = arith.mulf %206, %210 : vector<16x32xf32>
    %c96_61 = arith.constant 96 : index
    %c0_62 = arith.constant 0 : index
    %212 = vector.load %arg11[%c96_61, %c0_62] : memref<128x32xf32, #tpu.memory_space<vmem>>, vector<16x32xf32>
    tpu.vector_store %arg11[%c96_61, %c0_62], %211 {strides = array<i32>} : memref<128x32xf32, #tpu.memory_space<vmem>>, vector<16x32xf32>,
    %c112 = arith.constant 112 : index
    %c0_63 = arith.constant 0 : index
    %213 = vector.load %arg10[%c112, %c0_63] : memref<128x128xf32, #tpu.memory_space<vmem>>, vector<16x128xf32>
    %cst_64 = arith.constant dense<0.000000e+00> : vector<16x128xf32>
    %214 = tpu.matmul %211, %7, %cst_64 {dimension_numbers = #tpu.dot_dimension_numbers<[1], [0], [0], [1], [0, 0, 1, 1], [], []>} : vector<16x32xf32>, vector<32x128xf32>, vector<16x128xf32> -> vector<16x128xf32>
    %215 = arith.addf %213, %214 : vector<16x128xf32>
    %216 = vector.extract_strided_slice %215 {offsets = [0, 0], sizes = [16, 32], strides = [1, 1]} : vector<16x128xf32> to vector<16x32xf32>
    %217 = arith.negf %216 : vector<16x32xf32>
    %218 = math.exp %217 : vector<16x32xf32>
    %cst_65 = arith.constant 1.000000e+00 : f32
    %219 = vector.broadcast %cst_65 : f32 to vector<16x32xf32>
    %220 = arith.addf %219, %218 : vector<16x32xf32>
    %221 = arith.divf %219, %220 : vector<16x32xf32>
    %222 = vector.extract_strided_slice %215 {offsets = [0, 32], sizes = [16, 32], strides = [1, 1]} : vector<16x128xf32> to vector<16x32xf32>
    %223 = arith.negf %222 : vector<16x32xf32>
    %224 = math.exp %223 : vector<16x32xf32>
    %cst_66 = arith.constant 1.000000e+00 : f32
    %225 = vector.broadcast %cst_66 : f32 to vector<16x32xf32>
    %226 = arith.addf %225, %224 : vector<16x32xf32>
    %227 = arith.divf %225, %226 : vector<16x32xf32>
    %228 = vector.extract_strided_slice %215 {offsets = [0, 64], sizes = [16, 32], strides = [1, 1]} : vector<16x128xf32> to vector<16x32xf32>
    %229 = math.tanh %228 : vector<16x32xf32>
    %230 = vector.extract_strided_slice %215 {offsets = [0, 96], sizes = [16, 32], strides = [1, 1]} : vector<16x128xf32> to vector<16x32xf32>
    %231 = arith.negf %230 : vector<16x32xf32>
    %232 = math.exp %231 : vector<16x32xf32>
    %cst_67 = arith.constant 1.000000e+00 : f32
    %233 = vector.broadcast %cst_67 : f32 to vector<16x32xf32>
    %234 = arith.addf %233, %232 : vector<16x32xf32>
    %235 = arith.divf %233, %234 : vector<16x32xf32>
    %236 = arith.mulf %227, %209 : vector<16x32xf32>
    %237 = arith.mulf %221, %229 : vector<16x32xf32>
    %238 = arith.addf %236, %237 : vector<16x32xf32>
    %239 = math.tanh %238 : vector<16x32xf32>
    %240 = arith.mulf %235, %239 : vector<16x32xf32>
    %c112_68 = arith.constant 112 : index
    %c0_69 = arith.constant 0 : index
    %241 = vector.load %arg11[%c112_68, %c0_69] : memref<128x32xf32, #tpu.memory_space<vmem>>, vector<16x32xf32>
    tpu.vector_store %arg11[%c112_68, %c0_69], %240 {strides = array<i32>} : memref<128x32xf32, #tpu.memory_space<vmem>>, vector<16x32xf32>,
    %c0_70 = arith.constant 0 : index
    %c0_71 = arith.constant 0 : index
    %242 = vector.load %arg11[%c0_70, %c0_71] : memref<128x32xf32, #tpu.memory_space<vmem>>, vector<128x32xf32>
    %c0_72 = arith.constant 0 : index
    %c0_73 = arith.constant 0 : index
    %243 = vector.load %arg5[%c0_72, %c0_73] : memref<32x128xf32, #tpu.memory_space<vmem>>, vector<32x128xf32>
    %cst_74 = arith.constant dense<0.000000e+00> : vector<128x128xf32>
    %244 = tpu.matmul %242, %243, %cst_74 {dimension_numbers = #tpu.dot_dimension_numbers<[1], [0], [0], [1], [0, 0, 1, 1], [], []>} : vector<128x32xf32>, vector<32x128xf32>, vector<128x128xf32> -> vector<128x128xf32>
    %c0_75 = arith.constant 0 : index
    %c0_76 = arith.constant 0 : index
    %245 = vector.load %arg6[%c0_75, %c0_76] : memref<1x128xf32, #tpu.memory_space<vmem>>, vector<1x128xf32>
    %246 = vector.broadcast %245 : vector<1x128xf32> to vector<128x128xf32>
    %247 = arith.addf %244, %246 : vector<128x128xf32>
    %cst_77 = arith.constant 0.000000e+00 : f32
    %248 = vector.broadcast %cst_77 : f32 to vector<128x128xf32>
    %249 = arith.maximumf %247, %248 : vector<128x128xf32>
    %c0_78 = arith.constant 0 : index
    %c0_79 = arith.constant 0 : index
    %250 = vector.load %arg9[%c0_78, %c0_79] : memref<128x128xf32, #tpu.memory_space<vmem>>, vector<128x128xf32>
    tpu.vector_store %arg9[%c0_78, %c0_79], %249 {strides = array<i32>} : memref<128x128xf32, #tpu.memory_space<vmem>>, vector<128x128xf32>,
    return
  }
  func.func @transform_0(%arg0: i32) -> (i32, i32) {
    %c0_i32 = arith.constant 0 : i32
    %c0_i32_0 = arith.constant 0 : i32
    %c0_i32_1 = arith.constant 0 : i32
    return %c0_i32, %c0_i32_0 : i32, i32
  }
  func.func @transform_1(%arg0: i32) -> (i32, i32) {
    %c0_i32 = arith.constant 0 : i32
    %c0_i32_0 = arith.constant 0 : i32
    %c0_i32_1 = arith.constant 0 : i32
    return %c0_i32, %c0_i32_0 : i32, i32
  }
  func.func @transform_2(%arg0: i32) -> (i32, i32) {
    %c0_i32 = arith.constant 0 : i32
    %c0_i32_0 = arith.constant 0 : i32
    %c0_i32_1 = arith.constant 0 : i32
    return %c0_i32, %c0_i32_0 : i32, i32
  }
  func.func @transform_3(%arg0: i32) -> (i32, i32) {
    %c0_i32 = arith.constant 0 : i32
    %c0_i32_0 = arith.constant 0 : i32
    %c0_i32_1 = arith.constant 0 : i32
    return %c0_i32, %c0_i32_0 : i32, i32
  }
  func.func @transform_4(%arg0: i32) -> (i32, i32) {
    %c0_i32 = arith.constant 0 : i32
    %c0_i32_0 = arith.constant 0 : i32
    %c0_i32_1 = arith.constant 0 : i32
    return %c0_i32, %c0_i32_0 : i32, i32
  }
  func.func @transform_5(%arg0: i32) -> (i32, i32) {
    %c0_i32 = arith.constant 0 : i32
    %c0_i32_0 = arith.constant 0 : i32
    %c0_i32_1 = arith.constant 0 : i32
    return %c0_i32, %c0_i32_0 : i32, i32
  }
  func.func @transform_6(%arg0: i32) -> (i32, i32) {
    %c0_i32 = arith.constant 0 : i32
    %c0_i32_0 = arith.constant 0 : i32
    %c0_i32_1 = arith.constant 0 : i32
    return %c0_i32, %c0_i32_0 : i32, i32
  }
  func.func @transform_7(%arg0: i32) -> (i32, i32) {
    %c0_i32 = arith.constant 0 : i32
    %c0_i32_0 = arith.constant 0 : i32
    %c0_i32_1 = arith.constant 0 : i32
    return %c0_i32, %c0_i32_0 : i32, i32
  }
  func.func @transform_8(%arg0: i32) -> (i32, i32) {
    %c0_i32 = arith.constant 0 : i32
    %c0_i32_0 = arith.constant 0 : i32
    %c0_i32_1 = arith.constant 0 : i32
    return %c0_i32, %c0_i32_0 : i32, i32
  }
}

</mosaic_0001>

<bundles_post_ra>
// kernel: tpu_custom_call.1
= control target key start
LH: loop header
LB: loop body
LE: loop exit
PB: predicated region body
PF: predicated region fallthrough
CT: control target
= control target key end

     0   :  { %vm54_vm0 = vcmask 64512   ;;  %vm274_vm1 = vcmask 261120   ;;  %s2688_s0 = inlined_call_operand.vmem [shape: f32[128,8], index: 0, kind: input, shape index: {}]   ;;  %s2689_s1 = inlined_call_operand.vmem [shape: f32[8,128], index: 1, kind: input, shape index: {}]   ;;  %s2690_s2 = inlined_call_operand.vmem [shape: f32[32,128], index: 2, kind: input, shape index: {}]   ;;  %s2691_s3 = inlined_call_operand.vmem [shape: f32[1,128], index: 3, kind: input, shape index: {}]   ;;  %s2692_s4 = inlined_call_operand.vmem [shape: f32[32,128], index: 4, kind: input, shape index: {}]   ;;  %s2693_s5 = inlined_call_operand.vmem [shape: f32[1,128], index: 5, kind: input, shape index: {}]   ;;  %s2694_s6 = inlined_call_operand.vmem [shape: f32[16,32], index: 6, kind: input, shape index: {}]   ;;  %s2695_s7 = inlined_call_operand.vmem [shape: f32[16,32], index: 7, kind: input, shape index: {}]   ;;  %s2696_s8 = inlined_call_operand.hbm [shape: f32[128,128], index: 8, kind: output, shape index: {}]  }
   0x1   :  { %v264_v0 = vld [vmem:[%s2690_s2] sm:$0xff]  ;;  %v265_v1 = vld [vmem:[%s2690_s2 + $0x8] sm:$0xff]  ;;  %v266_v5 = vld [vmem:[%s2690_s2 + $0x10] sm:$0xff] }
   0x2   :  { %v46_v2 = vld [vmem:[%s2689_s1] sm:$0xff]  ;;  %v2297_v3 = vpack.c.bf16 %v265_v1, %v264_v0  ;;  %v267_v6 = vld [vmem:[%s2690_s2 + $0x18] sm:$0xff]  ;;  %v31_v8 = vld [vmem:[%s2688_s0 + $0x8] sm:$0xff] }
   0x3   :  { %1830 = vmatprep.subr.mxu1 %v46_v2  ;;  %v30_v4 = vld [vmem:[%s2688_s0] sm:$0xff]  ;;  %v2309_v7 = vpack.c.bf16 %v267_v6, %v266_v5 }
   0x4   :  { %1831 = vmatpush3.msra.mxu1 %v46_v2  ;;  %1832 = vmatprep.mubr.msk.f32.mxu1 %vm54_vm0, %v30_v4  ;;  %v268_v9 = vld [vmem:[%s2694_s6] sm:$0xff] }
   0x5   :  { %1977 = vmatprep.subr.bf16.mxu0 %v2297_v3  ;;  %1833 = vmatmul.mubr.msk.f32.vlgmr.msra.gmra.mrb[0].mxu1 %vm54_vm0, %v31_v8  ;;  %v270_v10 = vld [vmem:[%s2695_s7] sm:$0xff] }
   0x6   :  { %13 = vsyncpa [#allocation5], 0  ;;  %1979 = vmatpush3.bf16.msra.mxu0 %v2297_v3  ;;  %1864 = vmatprep.mubr.msk.f32.mxu0 %vm274_vm1, %v268_v9  ;;  %s2238_s21 = smov 32   ;;  %v271_v11 = vld [vmem:[%s2695_s7 + $0x8] sm:$0xff]  ;;  %v2343_v15 = vld [vmem:[%s2691_s3] ss:$0 sm:$0xff] }
   0x7   :  { %1981 = vmatprep.subr.bf16.mxu0 %v2309_v7  ;;  %374 = vrot.lane.b32.xlu1 %v270_v10, %s2238_s21  ;;  %v269_v12 = vld [vmem:[%s2694_s6 + $0x8] sm:$0xff]  ;;  %s2239_s6 = smov 64   ;;  %v32_v44 = vld [vmem:[%s2688_s0 + $0x10] sm:$0xff]  ;;  %v33_v45 = vld [vmem:[%s2688_s0 + $0x18] sm:$0xff] }
   0x8   :  { %v34_v46 = vld [vmem:[%s2688_s0 + $0x20] sm:$0xff]  ;;  %1835 = vmatprep.mubr.msk.f32.mxu1 %vm54_vm0, %v32_v44  ;;  %v35_v47 = vld [vmem:[%s2688_s0 + $0x28] sm:$0xff]  ;;  %v36_v48 = vld [vmem:[%s2688_s0 + $0x30] sm:$0xff] }
   0x9   :  { %1836 = vmatmul.mubr.msk.f32.gmra.mrb[2].mxu1 %vm54_vm0, %v33_v45  ;;  %v37_v50 = vld [vmem:[%s2688_s0 + $0x38] sm:$0xff]  ;;  %v38_v51 = vld [vmem:[%s2688_s0 + $0x40] sm:$0xff]  ;;  %v39_v53 = vld [vmem:[%s2688_s0 + $0x48] sm:$0xff] }
   0xa   :  { %1983 = vmatpush3.bf16.msra.mxu0 %v2309_v7  ;;  %1838 = vmatprep.mubr.msk.f32.mxu1 %vm54_vm0, %v34_v46  ;;  %v40_v54 = vld [vmem:[%s2688_s0 + $0x50] sm:$0xff]  ;;  %v41_v55 = vld [vmem:[%s2688_s0 + $0x58] sm:$0xff]  ;;  %v42_v56 = vld [vmem:[%s2688_s0 + $0x60] sm:$0xff] }
   0xb   :  { %376 = vrot.lane.b32.xlu1 %v271_v11, %s2238_s21  ;;  %1985 = vmatprep.subr.bf16.mxu0 %v2297_v3  ;;  %v43_v57 = vld [vmem:[%s2688_s0 + $0x68] sm:$0xff]  ;;  %v1427_v58 = vld [vmem:[%s2692_s4] sm:$0xff]  ;;  %v44_v61 = vld [vmem:[%s2688_s0 + $0x70] sm:$0xff] }
   0xc   :  { %v1428_v59 = vld [vmem:[%s2692_s4 + $0x8] sm:$0xff]  ;;  %v45_v62 = vld [vmem:[%s2688_s0 + $0x78] sm:$0xff]  ;;  %v1429_v63 = vld [vmem:[%s2692_s4 + $0x10] sm:$0xff] }
   0xd   :  { %1865 = vmatmul.mubr.msk.f32.vlgmr.msra.gmra.mrb[0].mxu0 %vm274_vm1, %v269_v12  ;;  %1839 = vmatmul.mubr.msk.f32.gmra.mrb[4].mxu1 %vm54_vm0, %v35_v47  ;;  %v2040_v60 = vpack.c.bf16 %v1428_v59, %v1427_v58  ;;  %v1430_v0 = vld [vmem:[%s2692_s4 + $0x18] sm:$0xff] }
   0xe   :  { %1987 = vmatpush3.bf16.msra.mxu0 %v2297_v3  ;;  %1841 = vmatprep.mubr.msk.f32.mxu1 %vm54_vm0, %v36_v48  ;;  %v2044_v1 = vpack.c.bf16 %v1430_v0, %v1429_v63 }
   0xf   :  { %1989 = vmatprep.subr.bf16.mxu0 %v2309_v7  ;;  %2041 = vmatprep.subr.bf16.mxu1 %v2040_v60 }
  0x10   :  { %2043 = vmatpush3.bf16.msra.mxu1 %v2040_v60 }
  0x11   :  { %1842 = vmatmul.mubr.msk.f32.gmra.mrb[6].mxu1 %vm54_vm0, %v37_v50  ;;  %2045 = vmatprep.subr.bf16.mxu1 %v2044_v1 }
  0x12   :  { %1991 = vmatpush3.bf16.msra.mxu0 %v2309_v7  ;;  %1844 = vmatprep.mubr.msk.f32.mxu1 %vm54_vm0, %v38_v51 }
  0x13   :  { %1993 = vmatprep.subr.bf16.mxu0 %v2297_v3 }
  0x14   :  { %2047 = vmatpush3.bf16.msra.mxu1 %v2044_v1 }
  0x15   :  { %1845 = vmatmul.mubr.msk.f32.gmra.mrb[8].mxu1 %vm54_vm0, %v39_v53 }
  0x16   :  { %1847 = vmatprep.mubr.msk.f32.mxu1 %vm54_vm0, %v40_v54 }
  0x19   :  { %1848 = vmatmul.mubr.msk.f32.gmra.mrb[10].mxu1 %vm54_vm0, %v41_v55 }
  0x1a   :  { %1850 = vmatprep.mubr.msk.f32.mxu1 %vm54_vm0, %v42_v56 }
  0x1d   :  { %1851 = vmatmul.mubr.msk.f32.gmra.mrb[12].mxu1 %vm54_vm0, %v43_v57 }
  0x1e   :  { %1853 = vmatprep.mubr.msk.f32.mxu1 %vm54_vm0, %v44_v61 }
  0x21   :  { %1854 = vmatmul.mubr.msk.f32.gmra.mrb[14].mxu1 %vm54_vm0, %v45_v62 }
  0x79   :  { %v375_v36 = vpop.permute.xlu1 %374 }
  0x7d   :  { %v377_v38 = vpop.permute.xlu1 %376 }
  0xd8   :  { %v1834_v13 = vpop.f32.mrb[0].mxu1 }
  0xd9   :  { %v169_v14 = vpop.f32.mrb[1].mxu1  ;;  %v175_v16 = vadd.f32 %v1834_v13, %v2343_v15 }
  0xda   :  { %v170_v17 = vadd.f32 %v2343_v15, %v169_v14 }
  0xdc   :  { %v1837_v8 = vpop.f32.mrb[2].mxu1 }
  0xdd   :  { %v179_v9 = vpop.f32.mrb[3].mxu1 }
  0xe0   :  { %v1866_v18 = vpop.f32.mrb[0].mxu0  ;;  %v2429_v10 = vpop.f32.mrb[4].mxu1 }
  0xe1   :  { %v357_v19 = vadd.f32 %v1866_v18, %v175_v16  ;;  %v347_v20 = vpop.f32.mrb[1].mxu0  ;;  %v2431_v11 = vpop.f32.mrb[5].mxu1 }
  0xe2   :  { %v356_v21 = vadd.f32 %v347_v20, %v170_v17 }
  0xe3   :  { %v1699_v25 = vmul.f32 -1.442695, %v357_v19 }
  0xe4   :  { %2085 = vtanh.f32 %v356_v21  ;;  %v1698_v24 = vmul.f32 -1.442695, %v356_v21  ;;  %v2433_v12 = vpop.f32.mrb[6].mxu1 }
  0xe5   :  { %2087 = vtanh.f32 %v357_v19  ;;  %v2435_v13 = vpop.f32.mrb[7].mxu1 }
  0xe6   :  { %2089 = vpow2.f32 %v1698_v24 }
  0xe7   :  { %2091 = vpow2.f32 %v1699_v25 }
  0xe8   :  { %v2437_v14 = vpop.f32.mrb[8].mxu1 }
  0xe9   :  { %v2449_v20 = vpop.f32.mrb[9].mxu1 }
  0xec   :  { %v2451_v21 = vpop.f32.mrb[10].mxu1 }
  0xee   :  { %v2086_v22 = vpop.eup %2085 }
  0xef   :  { %384 = vrot.lane.b32.xlu0 %v2086_v22, %s2239_s6  ;;  %v2088_v23 = vpop.eup %2087  ;;  %v2453_v22 = vpop.f32.mrb[11].mxu1 }
  0xf0   :  { %v2090_v26 = vpop.eup %2089 }
  0xf1   :  { %v364_v27 = vadd.f32 1.0, %v2090_v26  ;;  %v2092_v28 = vpop.eup %2091 }
  0xf2   :  { %v365_v29 = vadd.f32 1.0, %v2092_v28  ;;  %v180_v28 = vadd.f32 %v2343_v15, %v179_v9  ;;  %v190_v9 = vadd.f32 %v2343_v15, %v2431_v11 }
  0xf3   :  { %386 = vrot.lane.b32.xlu0 %v2088_v23, %s2239_s6  ;;  %2093 = vrcp.f32 %v364_v27  ;;  %v2455_v23 = vpop.f32.mrb[12].mxu1  ;;  %v185_v27 = vadd.f32 %v1837_v8, %v2343_v15  ;;  %v195_v8 = vadd.f32 %v2429_v10, %v2343_v15 }
  0xf4   :  { %2095 = vrcp.f32 %v365_v29  ;;  %v2457_v24 = vpop.f32.mrb[13].mxu1 }
  0xf5   :  { %v2459_v25 = vpop.f32.mrb[14].mxu1 }
  0xf6   :  { %v2461_v26 = vpop.f32.mrb[15].mxu1 }
  0xfd   :  { %v2094_v30 = vpop.eup %2093 }
  0xfe   :  { %v2096_v33 = vpop.eup %2095  ;;  %v380_v37 = vmul.f32 %v2094_v30, %v375_v36 }
  0xff   :  { %v381_v41 = vmul.f32 %v2096_v33, %v377_v38 }
 0x161   :  { %v385_v31 = vpop.permute.xlu0 %384 }
 0x162   :  { %v390_v32 = vmul.f32 %v2094_v30, %v385_v31 }
 0x164   :  { %394 = vrot.lane.b32.xlu0 %v390_v32, %s2238_s21 }
 0x165   :  { %v387_v34 = vpop.permute.xlu0 %386 }
 0x166   :  { %v391_v35 = vmul.f32 %v2096_v33, %v387_v34 }
 0x168   :  { %396 = vrot.lane.b32.xlu1 %v391_v35, %s2238_s21 }
 0x1d6   :  { %v395_v39 = vpop.permute.xlu0 %394 }
 0x1d7   :  { %v2351_v40 = vadd.f32 %v395_v39, %v380_v37 }
 0x1d9   :  { %2097 = vtanh.f32 %v2351_v40 }
 0x1da   :  { %v397_v42 = vpop.permute.xlu1 %396 }
 0x1db   :  { %v2354_v43 = vadd.f32 %v397_v42, %v381_v41 }
 0x1dd   :  { %2099 = vtanh.f32 %v2354_v43 }
 0x1e3   :  { %v2098_v49 = vpop.eup %2097 }
 0x1e4   :  { %406 = vrot.lane.b32.xlu0 %v2098_v49, %s2239_s6 }
 0x1e7   :  { %v2100_v52 = vpop.eup %2099 }
 0x1e8   :  { %408 = vrot.lane.b32.xlu1 %v2100_v52, %s2239_s6 }
 0x256   :  { %v407_v2 = vpop.permute.xlu0 %406 }
 0x257   :  { %v412_v4 = vmul.f32 %v2094_v30, %v407_v2 }
 0x259   :  { %416 = vrot.lane.b32.xlu0 %v412_v4, %s2238_s21 }
 0x25a   :  { %v409_v5 = vpop.permute.xlu1 %408 }
 0x25b   :  { %v413_v6 = vmul.f32 %v2096_v33, %v409_v5  ;;  %v2468_v33 = vld [vmem:[%s2693_s5] ss:$0 sm:$0xff] }
 0x25d   :  { %418 = vrot.lane.b32.xlu1 %v413_v6, %s2238_s21 }
 0x2cb   :  { %v417_v16 = vpop.permute.xlu0 %416 }
 0x2cc   :  { %422 = vst.msk [vmem:[#allocation3] sm:$0xff] %vm274_vm1, %v417_v16  ;;  %1875 = vmatprep.mubr.msk.f32.mxu0 %vm274_vm1, %v417_v16 }
 0x2cf   :  { %v419_v17 = vpop.permute.xlu1 %418 }
 0x2d0   :  { %423 = vst.msk [vmem:[#allocation3 + $0x8] sm:$0xff] %vm274_vm1, %v419_v17  ;;  %1876 = vmatmul.mubr.msk.f32.vlgmr.msra.gmra.mrb[2].mxu0 %vm274_vm1, %v419_v17 }
 0x2d1   :  { %1995 = vmatpush3.bf16.msra.mxu0 %v2297_v3 }
 0x2d2   :  { %1997 = vmatprep.subr.bf16.mxu0 %v2309_v7 }
 0x2d3   :  { %v1411_v18 = vld [vmem:[#allocation3] sm:$0xff] }
 0x2d4   :  { %1952 = vmatprep.mubr.msk.f32.mxu1 %vm274_vm1, %v1411_v18 }
 0x2d5   :  { %1999 = vmatpush3.bf16.msra.mxu0 %v2309_v7 }
 0x2d6   :  { %2001 = vmatprep.subr.bf16.mxu0 %v2297_v3 }
 0x2d7   :  { %v1412_v19 = vld [vmem:[#allocation3 + $0x8] sm:$0xff] }
 0x2d8   :  { %1953 = vmatmul.mubr.msk.f32.vlgmr.msra.gmra.mrb[16].mxu1 %vm274_vm1, %v1412_v19 }
 0x3a3   :  { %v1877_v29 = vpop.f32.mrb[2].mxu0 }
 0x3a4   :  { %v506_v30 = vadd.f32 %v1877_v29, %v185_v27  ;;  %v496_v31 = vpop.f32.mrb[3].mxu0 }
 0x3a5   :  { %v505_v32 = vadd.f32 %v496_v31, %v180_v28 }
 0x3a6   :  { %2101 = vtanh.f32 %v506_v30  ;;  %v1703_v44 = vmul.f32 -1.442695, %v506_v30 }
 0x3a7   :  { %2103 = vtanh.f32 %v505_v32  ;;  %v1702_v45 = vmul.f32 -1.442695, %v505_v32 }
 0x3a8   :  { %2105 = vpow2.f32 %v1703_v44 }
 0x3a9   :  { %2107 = vpow2.f32 %v1702_v45 }
 0x3ab   :  { %v1954_v34 = vpop.f32.mrb[16].mxu1 }
 0x3ac   :  { %v1558_v35 = vadd.f32 %v1954_v34, %v2468_v33  ;;  %v1552_v36 = vpop.f32.mrb[17].mxu1 }
 0x3ad   :  { %v1553_v37 = vadd.f32 %v2468_v33, %v1552_v36 }
 0x3ae   :  { %v1632_v38 = vmax.f32 %v1558_v35, 0.0 }
 0x3af   :  { %v1631_v39 = vmax.f32 %v1553_v37, 0.0 }
 0x3b0   :  { %v2102_v41 = vpop.eup %2101  ;;  %1648 = vst [vmem:[#allocation4 + $0x8] sm:$0xff] %v1632_v38 }
 0x3b1   :  { %v2104_v42 = vpop.eup %2103  ;;  %1647 = vst [vmem:[#allocation4] sm:$0xff] %v1631_v39  ;;  %527 = vrot.lane.b32.xlu1 %v2102_v41, %s2239_s6 }
 0x3b2   :  { %525 = vrot.lane.b32.xlu0 %v2104_v42, %s2239_s6  ;;  %v2106_v46 = vpop.eup %2105 }
 0x3b3   :  { %v2108_v47 = vpop.eup %2107  ;;  %v514_v48 = vadd.f32 1.0, %v2106_v46 }
 0x3b4   :  { %v513_v49 = vadd.f32 1.0, %v2108_v47 }
 0x3b5   :  { %2109 = vrcp.f32 %v514_v48 }
 0x3b6   :  { %2111 = vrcp.f32 %v513_v49 }
 0x3bf   :  { %v2110_v50 = vpop.eup %2109 }
 0x3c0   :  { %v2112_v52 = vpop.eup %2111  ;;  %v522_v56 = vmul.f32 %v2110_v50, %v2354_v43 }
 0x3c1   :  { %v521_v58 = vmul.f32 %v2112_v52, %v2351_v40 }
 0x423   :  { %v528_v51 = vpop.permute.xlu1 %527 }
 0x424   :  { %v532_v53 = vmul.f32 %v2110_v50, %v528_v51  ;;  %v526_v54 = vpop.permute.xlu0 %525 }
 0x425   :  { %v531_v55 = vmul.f32 %v2112_v52, %v526_v54 }
 0x426   :  { %537 = vrot.lane.b32.xlu1 %v532_v53, %s2238_s21 }
 0x427   :  { %535 = vrot.lane.b32.xlu0 %v531_v55, %s2238_s21 }
 0x498   :  { %v538_v57 = vpop.permute.xlu1 %537 }
 0x499   :  { %v2478_v59 = vadd.f32 %v538_v57, %v522_v56  ;;  %v536_v60 = vpop.permute.xlu0 %535 }
 0x49a   :  { %v2480_v61 = vadd.f32 %v536_v60, %v521_v58 }
 0x49b   :  { %2113 = vtanh.f32 %v2478_v59 }
 0x49c   :  { %2115 = vtanh.f32 %v2480_v61 }
 0x4a5   :  { %v2114_v62 = vpop.eup %2113 }
 0x4a6   :  { %v2116_v63 = vpop.eup %2115  ;;  %549 = vrot.lane.b32.xlu1 %v2114_v62, %s2239_s6 }
 0x4a7   :  { %547 = vrot.lane.b32.xlu0 %v2116_v63, %s2239_s6 }
 0x518   :  { %v550_v0 = vpop.permute.xlu1 %549 }
 0x519   :  { %v554_v43 = vmul.f32 %v2110_v50, %v550_v0  ;;  %v548_v1 = vpop.permute.xlu0 %547  ;;  %v205_v0 = vadd.f32 %v2433_v12, %v2343_v15 }
 0x51a   :  { %v553_v2 = vmul.f32 %v2112_v52, %v548_v1 }
 0x51b   :  { %559 = vrot.lane.b32.xlu1 %v554_v43, %s2238_s21  ;;  %v200_v43 = vadd.f32 %v2343_v15, %v2435_v13 }
 0x51c   :  { %557 = vrot.lane.b32.xlu0 %v553_v2, %s2238_s21 }
 0x58d   :  { %v560_v40 = vpop.permute.xlu1 %559 }
 0x58e   :  { %564 = vst.msk [vmem:[#allocation3 + $0x18] sm:$0xff] %vm274_vm1, %v560_v40  ;;  %v558_v4 = vpop.permute.xlu0 %557 }
 0x58f   :  { %563 = vst.msk [vmem:[#allocation3 + $0x10] sm:$0xff] %vm274_vm1, %v558_v4  ;;  %1886 = vmatprep.mubr.msk.f32.mxu0 %vm274_vm1, %v558_v4 }
 0x590   :  { %1887 = vmatmul.mubr.msk.f32.vlgmr.msra.gmra.mrb[4].mxu0 %vm274_vm1, %v560_v40 }
 0x591   :  { %2003 = vmatpush3.bf16.msra.mxu0 %v2297_v3 }
 0x592   :  { %2005 = vmatprep.subr.bf16.mxu0 %v2309_v7 }
 0x595   :  { %2007 = vmatpush3.bf16.msra.mxu0 %v2309_v7  ;;  %v1414_v6 = vld [vmem:[#allocation3 + $0x18] sm:$0xff] }
 0x596   :  { %v1413_v5 = vld [vmem:[#allocation3 + $0x10] sm:$0xff]  ;;  %2009 = vmatprep.subr.bf16.mxu0 %v2297_v3 }
 0x597   :  { %1955 = vmatprep.mubr.msk.f32.mxu1 %vm274_vm1, %v1413_v5 }
 0x598   :  { %1956 = vmatmul.mubr.msk.f32.gmra.mrb[18].mxu1 %vm274_vm1, %v1414_v6 }
 0x663   :  { %v1888_v16 = vpop.f32.mrb[4].mxu0 }
 0x664   :  { %v647_v17 = vadd.f32 %v1888_v16, %v195_v8  ;;  %v637_v18 = vpop.f32.mrb[5].mxu0 }
 0x665   :  { %v646_v19 = vadd.f32 %v637_v18, %v190_v9 }
 0x666   :  { %2117 = vtanh.f32 %v647_v17  ;;  %v1707_v11 = vmul.f32 -1.442695, %v647_v17 }
 0x667   :  { %2119 = vtanh.f32 %v646_v19  ;;  %v1706_v35 = vmul.f32 -1.442695, %v646_v19 }
 0x668   :  { %2121 = vpow2.f32 %v1707_v11 }
 0x669   :  { %2123 = vpow2.f32 %v1706_v35 }
 0x66b   :  { %v1957_v27 = vpop.f32.mrb[18].mxu1 }
 0x66c   :  { %v1568_v28 = vadd.f32 %v1957_v27, %v2468_v33  ;;  %v1562_v29 = vpop.f32.mrb[19].mxu1 }
 0x66d   :  { %v1563_v30 = vadd.f32 %v2468_v33, %v1562_v29 }
 0x66e   :  { %v1634_v31 = vmax.f32 %v1568_v28, 0.0 }
 0x66f   :  { %v1633_v32 = vmax.f32 %v1563_v30, 0.0 }
 0x670   :  { %v2118_v34 = vpop.eup %2117  ;;  %1650 = vst [vmem:[#allocation4 + $0x18] sm:$0xff] %v1634_v31 }
 0x671   :  { %v2120_v10 = vpop.eup %2119  ;;  %1649 = vst [vmem:[#allocation4 + $0x10] sm:$0xff] %v1633_v32  ;;  %668 = vrot.lane.b32.xlu1 %v2118_v34, %s2239_s6 }
 0x672   :  { %666 = vrot.lane.b32.xlu0 %v2120_v10, %s2239_s6  ;;  %v2122_v36 = vpop.eup %2121 }
 0x673   :  { %v2124_v37 = vpop.eup %2123  ;;  %v655_v38 = vadd.f32 1.0, %v2122_v36 }
 0x674   :  { %v654_v39 = vadd.f32 1.0, %v2124_v37 }
 0x675   :  { %2125 = vrcp.f32 %v655_v38 }
 0x676   :  { %2127 = vrcp.f32 %v654_v39 }
 0x67f   :  { %v2126_v41 = vpop.eup %2125 }
 0x680   :  { %v2128_v44 = vpop.eup %2127  ;;  %v663_v48 = vmul.f32 %v2126_v41, %v2478_v59 }
 0x681   :  { %v662_v50 = vmul.f32 %v2128_v44, %v2480_v61 }
 0x6e3   :  { %v669_v42 = vpop.permute.xlu1 %668 }
 0x6e4   :  { %v673_v45 = vmul.f32 %v2126_v41, %v669_v42  ;;  %v667_v46 = vpop.permute.xlu0 %666 }
 0x6e5   :  { %v672_v47 = vmul.f32 %v2128_v44, %v667_v46 }
 0x6e6   :  { %678 = vrot.lane.b32.xlu1 %v673_v45, %s2238_s21 }
 0x6e7   :  { %676 = vrot.lane.b32.xlu0 %v672_v47, %s2238_s21 }
 0x758   :  { %v679_v49 = vpop.permute.xlu1 %678 }
 0x759   :  { %v2510_v51 = vadd.f32 %v679_v49, %v663_v48  ;;  %v677_v52 = vpop.permute.xlu0 %676 }
 0x75a   :  { %v2512_v53 = vadd.f32 %v677_v52, %v662_v50 }
 0x75b   :  { %2129 = vtanh.f32 %v2510_v51 }
 0x75c   :  { %2131 = vtanh.f32 %v2512_v53 }
 0x765   :  { %v2130_v54 = vpop.eup %2129 }
 0x766   :  { %v2132_v55 = vpop.eup %2131  ;;  %690 = vrot.lane.b32.xlu1 %v2130_v54, %s2239_s6  ;;  %v215_v54 = vadd.f32 %v2437_v14, %v2343_v15 }
 0x767   :  { %688 = vrot.lane.b32.xlu0 %v2132_v55, %s2239_s6  ;;  %v210_v55 = vadd.f32 %v2343_v15, %v2449_v20 }
 0x7d8   :  { %v691_v56 = vpop.permute.xlu1 %690 }
 0x7d9   :  { %v695_v57 = vmul.f32 %v2126_v41, %v691_v56  ;;  %v689_v58 = vpop.permute.xlu0 %688 }
 0x7da   :  { %v694_v59 = vmul.f32 %v2128_v44, %v689_v58 }
 0x7db   :  { %700 = vrot.lane.b32.xlu1 %v695_v57, %s2238_s21 }
 0x7dc   :  { %698 = vrot.lane.b32.xlu0 %v694_v59, %s2238_s21 }
 0x84d   :  { %v701_v60 = vpop.permute.xlu1 %700 }
 0x84e   :  { %705 = vst.msk [vmem:[#allocation3 + $0x28] sm:$0xff] %vm274_vm1, %v701_v60  ;;  %v699_v61 = vpop.permute.xlu0 %698 }
 0x84f   :  { %704 = vst.msk [vmem:[#allocation3 + $0x20] sm:$0xff] %vm274_vm1, %v699_v61  ;;  %1897 = vmatprep.mubr.msk.f32.mxu0 %vm274_vm1, %v699_v61 }
 0x850   :  { %1898 = vmatmul.mubr.msk.f32.vlgmr.msra.gmra.mrb[6].mxu0 %vm274_vm1, %v701_v60 }
 0x851   :  { %2011 = vmatpush3.bf16.msra.mxu0 %v2297_v3 }
 0x852   :  { %2013 = vmatprep.subr.bf16.mxu0 %v2309_v7 }
 0x855   :  { %2015 = vmatpush3.bf16.msra.mxu0 %v2309_v7  ;;  %v1416_v63 = vld [vmem:[#allocation3 + $0x28] sm:$0xff] }
 0x856   :  { %v1415_v62 = vld [vmem:[#allocation3 + $0x20] sm:$0xff]  ;;  %2017 = vmatprep.subr.bf16.mxu0 %v2297_v3 }
 0x857   :  { %1958 = vmatprep.mubr.msk.f32.mxu1 %vm274_vm1, %v1415_v62 }
 0x858   :  { %1959 = vmatmul.mubr.msk.f32.gmra.mrb[20].mxu1 %vm274_vm1, %v1416_v63 }
 0x923   :  { %v1899_v1 = vpop.f32.mrb[6].mxu0 }
 0x924   :  { %v788_v2 = vadd.f32 %v1899_v1, %v205_v0  ;;  %v778_v40 = vpop.f32.mrb[7].mxu0 }
 0x925   :  { %v787_v4 = vadd.f32 %v778_v40, %v200_v43 }
 0x926   :  { %2133 = vtanh.f32 %v788_v2  ;;  %v1711_v13 = vmul.f32 -1.442695, %v788_v2 }
 0x927   :  { %2135 = vtanh.f32 %v787_v4  ;;  %v1710_v19 = vmul.f32 -1.442695, %v787_v4 }
 0x928   :  { %2137 = vpow2.f32 %v1711_v13 }
 0x929   :  { %2139 = vpow2.f32 %v1710_v19 }
 0x92b   :  { %v1960_v5 = vpop.f32.mrb[20].mxu1 }
 0x92c   :  { %v1578_v6 = vadd.f32 %v1960_v5, %v2468_v33  ;;  %v1572_v8 = vpop.f32.mrb[21].mxu1 }
 0x92d   :  { %v1573_v9 = vadd.f32 %v2468_v33, %v1572_v8 }
 0x92e   :  { %v1636_v16 = vmax.f32 %v1578_v6, 0.0 }
 0x92f   :  { %v1635_v17 = vmax.f32 %v1573_v9, 0.0 }
 0x930   :  { %v2134_v18 = vpop.eup %2133  ;;  %1652 = vst [vmem:[#allocation4 + $0x28] sm:$0xff] %v1636_v16 }
 0x931   :  { %v2136_v12 = vpop.eup %2135  ;;  %1651 = vst [vmem:[#allocation4 + $0x20] sm:$0xff] %v1635_v17  ;;  %809 = vrot.lane.b32.xlu1 %v2134_v18, %s2239_s6 }
 0x932   :  { %807 = vrot.lane.b32.xlu0 %v2136_v12, %s2239_s6  ;;  %v2138_v27 = vpop.eup %2137 }
 0x933   :  { %v2140_v28 = vpop.eup %2139  ;;  %v796_v29 = vadd.f32 1.0, %v2138_v27 }
 0x934   :  { %v795_v30 = vadd.f32 1.0, %v2140_v28 }
 0x935   :  { %2141 = vrcp.f32 %v796_v29 }
 0x936   :  { %2143 = vrcp.f32 %v795_v30 }
 0x93f   :  { %v2142_v31 = vpop.eup %2141 }
 0x940   :  { %v2144_v34 = vpop.eup %2143  ;;  %v804_v36 = vmul.f32 %v2142_v31, %v2510_v51 }
 0x941   :  { %v803_v38 = vmul.f32 %v2144_v34, %v2512_v53 }
 0x9a3   :  { %v810_v32 = vpop.permute.xlu1 %809 }
 0x9a4   :  { %v814_v10 = vmul.f32 %v2142_v31, %v810_v32  ;;  %v808_v11 = vpop.permute.xlu0 %807 }
 0x9a5   :  { %v813_v35 = vmul.f32 %v2144_v34, %v808_v11 }
 0x9a6   :  { %819 = vrot.lane.b32.xlu1 %v814_v10, %s2238_s21 }
 0x9a7   :  { %817 = vrot.lane.b32.xlu0 %v813_v35, %s2238_s21 }
 0xa18   :  { %v820_v37 = vpop.permute.xlu1 %819 }
 0xa19   :  { %v2542_v39 = vadd.f32 %v820_v37, %v804_v36  ;;  %v818_v41 = vpop.permute.xlu0 %817 }
 0xa1a   :  { %v2544_v42 = vadd.f32 %v818_v41, %v803_v38  ;;  %v225_v41 = vadd.f32 %v2451_v21, %v2343_v15 }
 0xa1b   :  { %2145 = vtanh.f32 %v2542_v39 }
 0xa1c   :  { %2147 = vtanh.f32 %v2544_v42 }
 0xa25   :  { %v2146_v44 = vpop.eup %2145 }
 0xa26   :  { %v2148_v45 = vpop.eup %2147  ;;  %831 = vrot.lane.b32.xlu1 %v2146_v44, %s2239_s6 }
 0xa27   :  { %829 = vrot.lane.b32.xlu0 %v2148_v45, %s2239_s6 }
 0xa98   :  { %v832_v46 = vpop.permute.xlu1 %831 }
 0xa99   :  { %v836_v47 = vmul.f32 %v2142_v31, %v832_v46  ;;  %v830_v48 = vpop.permute.xlu0 %829 }
 0xa9a   :  { %v835_v49 = vmul.f32 %v2144_v34, %v830_v48 }
 0xa9b   :  { %841 = vrot.lane.b32.xlu1 %v836_v47, %s2238_s21 }
 0xa9c   :  { %839 = vrot.lane.b32.xlu0 %v835_v49, %s2238_s21 }
 0xb0d   :  { %v842_v50 = vpop.permute.xlu1 %841 }
 0xb0e   :  { %846 = vst.msk [vmem:[#allocation3 + $0x38] sm:$0xff] %vm274_vm1, %v842_v50  ;;  %v840_v51 = vpop.permute.xlu0 %839 }
 0xb0f   :  { %845 = vst.msk [vmem:[#allocation3 + $0x30] sm:$0xff] %vm274_vm1, %v840_v51  ;;  %1908 = vmatprep.mubr.msk.f32.mxu0 %vm274_vm1, %v840_v51 }
 0xb10   :  { %1909 = vmatmul.mubr.msk.f32.vlgmr.msra.gmra.mrb[8].mxu0 %vm274_vm1, %v842_v50 }
 0xb11   :  { %2019 = vmatpush3.bf16.msra.mxu0 %v2297_v3 }
 0xb12   :  { %2021 = vmatprep.subr.bf16.mxu0 %v2309_v7 }
 0xb15   :  { %2023 = vmatpush3.bf16.msra.mxu0 %v2309_v7  ;;  %v1418_v53 = vld [vmem:[#allocation3 + $0x38] sm:$0xff] }
 0xb16   :  { %v1417_v52 = vld [vmem:[#allocation3 + $0x30] sm:$0xff]  ;;  %2025 = vmatprep.subr.bf16.mxu0 %v2297_v3 }
 0xb17   :  { %1961 = vmatprep.mubr.msk.f32.mxu1 %vm274_vm1, %v1417_v52 }
 0xb18   :  { %1962 = vmatmul.mubr.msk.f32.gmra.mrb[22].mxu1 %vm274_vm1, %v1418_v53 }
 0xbe3   :  { %v1910_v56 = vpop.f32.mrb[8].mxu0 }
 0xbe4   :  { %v929_v57 = vadd.f32 %v1910_v56, %v215_v54  ;;  %v919_v58 = vpop.f32.mrb[9].mxu0 }
 0xbe5   :  { %v928_v59 = vadd.f32 %v919_v58, %v210_v55 }
 0xbe6   :  { %2149 = vtanh.f32 %v929_v57  ;;  %v1715_v20 = vmul.f32 -1.442695, %v929_v57 }
 0xbe7   :  { %2151 = vtanh.f32 %v928_v59  ;;  %v1714_v2 = vmul.f32 -1.442695, %v928_v59 }
 0xbe8   :  { %2153 = vpow2.f32 %v1715_v20 }
 0xbe9   :  { %2155 = vpow2.f32 %v1714_v2 }
 0xbeb   :  { %v1963_v60 = vpop.f32.mrb[22].mxu1 }
 0xbec   :  { %v1588_v61 = vadd.f32 %v1963_v60, %v2468_v33  ;;  %v1582_v62 = vpop.f32.mrb[23].mxu1 }
 0xbed   :  { %v1583_v63 = vadd.f32 %v2468_v33, %v1582_v62 }
 0xbee   :  { %v1638_v0 = vmax.f32 %v1588_v61, 0.0 }
 0xbef   :  { %v1637_v43 = vmax.f32 %v1583_v63, 0.0 }
 0xbf0   :  { %v2150_v1 = vpop.eup %2149  ;;  %1654 = vst [vmem:[#allocation4 + $0x38] sm:$0xff] %v1638_v0 }
 0xbf1   :  { %v2152_v14 = vpop.eup %2151  ;;  %1653 = vst [vmem:[#allocation4 + $0x30] sm:$0xff] %v1637_v43  ;;  %950 = vrot.lane.b32.xlu1 %v2150_v1, %s2239_s6 }
 0xbf2   :  { %948 = vrot.lane.b32.xlu0 %v2152_v14, %s2239_s6  ;;  %v2154_v40 = vpop.eup %2153 }
 0xbf3   :  { %v2156_v4 = vpop.eup %2155  ;;  %v937_v5 = vadd.f32 1.0, %v2154_v40 }
 0xbf4   :  { %v936_v6 = vadd.f32 1.0, %v2156_v4 }
 0xbf5   :  { %2157 = vrcp.f32 %v937_v5 }
 0xbf6   :  { %2159 = vrcp.f32 %v936_v6 }
 0xbff   :  { %v2158_v8 = vpop.eup %2157 }
 0xc00   :  { %v2160_v16 = vpop.eup %2159  ;;  %v945_v13 = vmul.f32 %v2158_v8, %v2542_v39 }
 0xc01   :  { %v944_v27 = vmul.f32 %v2160_v16, %v2544_v42  ;;  %v220_v42 = vadd.f32 %v2343_v15, %v2453_v22 }
 0xc63   :  { %v951_v9 = vpop.permute.xlu1 %950 }
 0xc64   :  { %v955_v17 = vmul.f32 %v2158_v8, %v951_v9  ;;  %v949_v18 = vpop.permute.xlu0 %948 }
 0xc65   :  { %v954_v12 = vmul.f32 %v2160_v16, %v949_v18 }
 0xc66   :  { %960 = vrot.lane.b32.xlu1 %v955_v17, %s2238_s21 }
 0xc67   :  { %958 = vrot.lane.b32.xlu0 %v954_v12, %s2238_s21 }
 0xcd8   :  { %v961_v19 = vpop.permute.xlu1 %960 }
 0xcd9   :  { %v2574_v28 = vadd.f32 %v961_v19, %v945_v13  ;;  %v959_v29 = vpop.permute.xlu0 %958 }
 0xcda   :  { %v2576_v30 = vadd.f32 %v959_v29, %v944_v27  ;;  %v235_v27 = vadd.f32 %v2455_v23, %v2343_v15 }
 0xcdb   :  { %2161 = vtanh.f32 %v2574_v28 }
 0xcdc   :  { %2163 = vtanh.f32 %v2576_v30 }
 0xce5   :  { %v2162_v31 = vpop.eup %2161 }
 0xce6   :  { %v2164_v32 = vpop.eup %2163  ;;  %972 = vrot.lane.b32.xlu1 %v2162_v31, %s2239_s6 }
 0xce7   :  { %970 = vrot.lane.b32.xlu0 %v2164_v32, %s2239_s6 }
 0xd58   :  { %v973_v34 = vpop.permute.xlu1 %972 }
 0xd59   :  { %v977_v10 = vmul.f32 %v2158_v8, %v973_v34  ;;  %v971_v11 = vpop.permute.xlu0 %970 }
 0xd5a   :  { %v976_v35 = vmul.f32 %v2160_v16, %v971_v11 }
 0xd5b   :  { %982 = vrot.lane.b32.xlu1 %v977_v10, %s2238_s21 }
 0xd5c   :  { %980 = vrot.lane.b32.xlu0 %v976_v35, %s2238_s21 }
 0xdcd   :  { %v983_v36 = vpop.permute.xlu1 %982 }
 0xdce   :  { %987 = vst.msk [vmem:[#allocation3 + $0x48] sm:$0xff] %vm274_vm1, %v983_v36  ;;  %v981_v37 = vpop.permute.xlu0 %980 }
 0xdcf   :  { %986 = vst.msk [vmem:[#allocation3 + $0x40] sm:$0xff] %vm274_vm1, %v981_v37  ;;  %1919 = vmatprep.mubr.msk.f32.mxu0 %vm274_vm1, %v981_v37 }
 0xdd0   :  { %1920 = vmatmul.mubr.msk.f32.vlgmr.msra.gmra.mrb[10].mxu0 %vm274_vm1, %v983_v36 }
 0xdd1   :  { %2027 = vmatpush3.bf16.msra.mxu0 %v2297_v3 }
 0xdd2   :  { %2029 = vmatprep.subr.bf16.mxu0 %v2309_v7 }
 0xdd5   :  { %2031 = vmatpush3.bf16.msra.mxu0 %v2309_v7  ;;  %v1420_v39 = vld [vmem:[#allocation3 + $0x48] sm:$0xff] }
 0xdd6   :  { %v1419_v38 = vld [vmem:[#allocation3 + $0x40] sm:$0xff]  ;;  %2033 = vmatprep.subr.bf16.mxu0 %v2297_v3 }
 0xdd7   :  { %1964 = vmatprep.mubr.msk.f32.mxu1 %vm274_vm1, %v1419_v38 }
 0xdd8   :  { %1965 = vmatmul.mubr.msk.f32.gmra.mrb[24].mxu1 %vm274_vm1, %v1420_v39 }
 0xea3   :  { %v1921_v44 = vpop.f32.mrb[10].mxu0 }
 0xea4   :  { %v1070_v45 = vadd.f32 %v1921_v44, %v225_v41  ;;  %v1060_v46 = vpop.f32.mrb[11].mxu0 }
 0xea5   :  { %v1069_v47 = vadd.f32 %v1060_v46, %v220_v42 }
 0xea6   :  { %2165 = vtanh.f32 %v1070_v45  ;;  %v1719_v22 = vmul.f32 -1.442695, %v1070_v45 }
 0xea7   :  { %2167 = vtanh.f32 %v1069_v47  ;;  %v1718_v55 = vmul.f32 -1.442695, %v1069_v47 }
 0xea8   :  { %2169 = vpow2.f32 %v1719_v22 }
 0xea9   :  { %2171 = vpow2.f32 %v1718_v55 }
 0xeab   :  { %v1966_v48 = vpop.f32.mrb[24].mxu1 }
 0xeac   :  { %v1598_v49 = vadd.f32 %v1966_v48, %v2468_v33  ;;  %v1592_v50 = vpop.f32.mrb[25].mxu1 }
 0xead   :  { %v1593_v51 = vadd.f32 %v2468_v33, %v1592_v50 }
 0xeae   :  { %v1640_v52 = vmax.f32 %v1598_v49, 0.0 }
 0xeaf   :  { %v1639_v53 = vmax.f32 %v1593_v51, 0.0 }
 0xeb0   :  { %v2166_v54 = vpop.eup %2165  ;;  %1656 = vst [vmem:[#allocation4 + $0x48] sm:$0xff] %v1640_v52 }
 0xeb1   :  { %v2168_v21 = vpop.eup %2167  ;;  %1655 = vst [vmem:[#allocation4 + $0x40] sm:$0xff] %v1639_v53  ;;  %1091 = vrot.lane.b32.xlu1 %v2166_v54, %s2239_s6 }
 0xeb2   :  { %1089 = vrot.lane.b32.xlu0 %v2168_v21, %s2239_s6  ;;  %v2170_v56 = vpop.eup %2169 }
 0xeb3   :  { %v2172_v57 = vpop.eup %2171  ;;  %v1078_v58 = vadd.f32 1.0, %v2170_v56 }
 0xeb4   :  { %v1077_v59 = vadd.f32 1.0, %v2172_v57 }
 0xeb5   :  { %2173 = vrcp.f32 %v1078_v58 }
 0xeb6   :  { %2175 = vrcp.f32 %v1077_v59 }
 0xebf   :  { %v2174_v60 = vpop.eup %2173 }
 0xec0   :  { %v2176_v62 = vpop.eup %2175  ;;  %v1086_v1 = vmul.f32 %v2174_v60, %v2574_v28  ;;  %v230_v28 = vadd.f32 %v2343_v15, %v2457_v24 }
 0xec1   :  { %v1085_v20 = vmul.f32 %v2176_v62, %v2576_v30 }
 0xf23   :  { %v1092_v61 = vpop.permute.xlu1 %1091 }
 0xf24   :  { %v1096_v63 = vmul.f32 %v2174_v60, %v1092_v61  ;;  %v1090_v0 = vpop.permute.xlu0 %1089 }
 0xf25   :  { %v1095_v43 = vmul.f32 %v2176_v62, %v1090_v0 }
 0xf26   :  { %1101 = vrot.lane.b32.xlu1 %v1096_v63, %s2238_s21  ;;  %v2213_v63 = vld [vmem:[%s2691_s3] ss:$0 sm:$0xff]  ;;  %s2240_s3 = smov [#allocation4]  }
 0xf27   :  { %1099 = vrot.lane.b32.xlu0 %v1095_v43, %s2238_s21  ;;  %v245_v0 = vadd.f32 %v2213_v63, %v2459_v25  ;;  %v240_v43 = vadd.f32 %v2213_v63, %v2461_v26 }
 0xf98   :  { %v1102_v14 = vpop.permute.xlu1 %1101 }
 0xf99   :  { %v2606_v2 = vadd.f32 %v1102_v14, %v1086_v1  ;;  %v1100_v40 = vpop.permute.xlu0 %1099 }
 0xf9a   :  { %v2608_v4 = vadd.f32 %v1100_v40, %v1085_v20 }
 0xf9b   :  { %2177 = vtanh.f32 %v2606_v2 }
 0xf9c   :  { %2179 = vtanh.f32 %v2608_v4 }
 0xfa5   :  { %v2178_v5 = vpop.eup %2177 }
 0xfa6   :  { %v2180_v6 = vpop.eup %2179  ;;  %1113 = vrot.lane.b32.xlu1 %v2178_v5, %s2239_s6 }
 0xfa7   :  { %1111 = vrot.lane.b32.xlu0 %v2180_v6, %s2239_s6 }
0x1018   :  { %v1114_v8 = vpop.permute.xlu1 %1113 }
0x1019   :  { %v1118_v9 = vmul.f32 %v2174_v60, %v1114_v8  ;;  %v1112_v16 = vpop.permute.xlu0 %1111 }
0x101a   :  { %v1117_v17 = vmul.f32 %v2176_v62, %v1112_v16 }
0x101b   :  { %1123 = vrot.lane.b32.xlu1 %v1118_v9, %s2238_s21 }
0x101c   :  { %1121 = vrot.lane.b32.xlu0 %v1117_v17, %s2238_s21 }
0x108d   :  { %v1124_v18 = vpop.permute.xlu1 %1123 }
0x108e   :  { %1128 = vst.msk [vmem:[#allocation3 + $0x58] sm:$0xff] %vm274_vm1, %v1124_v18  ;;  %v1122_v12 = vpop.permute.xlu0 %1121 }
0x108f   :  { %1127 = vst.msk [vmem:[#allocation3 + $0x50] sm:$0xff] %vm274_vm1, %v1122_v12  ;;  %1930 = vmatprep.mubr.msk.f32.mxu0 %vm274_vm1, %v1122_v12 }
0x1090   :  { %1931 = vmatmul.mubr.msk.f32.vlgmr.msra.gmra.mrb[12].mxu0 %vm274_vm1, %v1124_v18 }
0x1091   :  { %2035 = vmatpush3.bf16.msra.mxu0 %v2297_v3 }
0x1092   :  { %2037 = vmatprep.subr.bf16.mxu0 %v2309_v7 }
0x1095   :  { %2039 = vmatpush3.bf16.msra.mxu0 %v2309_v7  ;;  %v1422_v19 = vld [vmem:[#allocation3 + $0x58] sm:$0xff] }
0x1096   :  { %v1421_v13 = vld [vmem:[#allocation3 + $0x50] sm:$0xff] }
0x1097   :  { %1967 = vmatprep.mubr.msk.f32.mxu1 %vm274_vm1, %v1421_v13 }
0x1098   :  { %1968 = vmatmul.mubr.msk.f32.gmra.mrb[26].mxu1 %vm274_vm1, %v1422_v19 }
0x1163   :  { %v1932_v29 = vpop.f32.mrb[12].mxu0 }
0x1164   :  { %v1211_v30 = vadd.f32 %v1932_v29, %v235_v27  ;;  %v1201_v31 = vpop.f32.mrb[13].mxu0 }
0x1165   :  { %v1210_v3 = vadd.f32 %v1201_v31, %v230_v28 }
0x1166   :  { %2181 = vtanh.f32 %v1211_v30  ;;  %v1723_v15 = vmul.f32 -1.442695, %v1211_v30 }
0x1167   :  { %2183 = vtanh.f32 %v1210_v3  ;;  %v1722_v24 = vmul.f32 -1.442695, %v1210_v3 }
0x1168   :  { %2185 = vpow2.f32 %v1723_v15 }
0x1169   :  { %2187 = vpow2.f32 %v1722_v24 }
0x116b   :  { %v1969_v32 = vpop.f32.mrb[26].mxu1 }
0x116c   :  { %v1608_v7 = vadd.f32 %v1969_v32, %v2468_v33  ;;  %v1602_v34 = vpop.f32.mrb[27].mxu1 }
0x116d   :  { %v1603_v10 = vadd.f32 %v2468_v33, %v1602_v34 }
0x116e   :  { %v1642_v11 = vmax.f32 %v1608_v7, 0.0 }
0x116f   :  { %v1641_v35 = vmax.f32 %v1603_v10, 0.0 }
0x1170   :  { %v2182_v36 = vpop.eup %2181  ;;  %1658 = vst [vmem:[#allocation4 + $0x58] sm:$0xff] %v1642_v11 }
0x1171   :  { %v2184_v23 = vpop.eup %2183  ;;  %1657 = vst [vmem:[#allocation4 + $0x50] sm:$0xff] %v1641_v35  ;;  %1232 = vrot.lane.b32.xlu1 %v2182_v36, %s2239_s6 }
0x1172   :  { %1230 = vrot.lane.b32.xlu0 %v2184_v23, %s2239_s6  ;;  %v2186_v37 = vpop.eup %2185 }
0x1173   :  { %v2188_v38 = vpop.eup %2187  ;;  %v1219_v39 = vadd.f32 1.0, %v2186_v37 }
0x1174   :  { %v1218_v41 = vadd.f32 1.0, %v2188_v38 }
0x1175   :  { %2189 = vrcp.f32 %v1219_v39 }
0x1176   :  { %2191 = vrcp.f32 %v1218_v41 }
0x117f   :  { %v2190_v42 = vpop.eup %2189 }
0x1180   :  { %v2192_v45 = vpop.eup %2191  ;;  %v1227_v49 = vmul.f32 %v2190_v42, %v2606_v2 }
0x1181   :  { %v1226_v51 = vmul.f32 %v2192_v45, %v2608_v4 }
0x11e3   :  { %v1233_v44 = vpop.permute.xlu1 %1232 }
0x11e4   :  { %v1237_v46 = vmul.f32 %v2190_v42, %v1233_v44  ;;  %v1231_v47 = vpop.permute.xlu0 %1230 }
0x11e5   :  { %v1236_v48 = vmul.f32 %v2192_v45, %v1231_v47 }
0x11e6   :  { %1242 = vrot.lane.b32.xlu1 %v1237_v46, %s2238_s21 }
0x11e7   :  { %1240 = vrot.lane.b32.xlu0 %v1236_v48, %s2238_s21 }
0x1258   :  { %v1243_v50 = vpop.permute.xlu1 %1242 }
0x1259   :  { %v2637_v52 = vadd.f32 %v1243_v50, %v1227_v49  ;;  %v1241_v53 = vpop.permute.xlu0 %1240 }
0x125a   :  { %v2639_v54 = vadd.f32 %v1241_v53, %v1226_v51 }
0x125b   :  { %2193 = vtanh.f32 %v2637_v52 }
0x125c   :  { %2195 = vtanh.f32 %v2639_v54 }
0x1265   :  { %v2194_v21 = vpop.eup %2193 }
0x1266   :  { %v2196_v22 = vpop.eup %2195  ;;  %1254 = vrot.lane.b32.xlu1 %v2194_v21, %s2239_s6 }
0x1267   :  { %1252 = vrot.lane.b32.xlu0 %v2196_v22, %s2239_s6 }
0x12d8   :  { %v1255_v55 = vpop.permute.xlu1 %1254 }
0x12d9   :  { %v1259_v56 = vmul.f32 %v2190_v42, %v1255_v55  ;;  %v1253_v57 = vpop.permute.xlu0 %1252 }
0x12da   :  { %v1258_v58 = vmul.f32 %v2192_v45, %v1253_v57 }
0x12db   :  { %1264 = vrot.lane.b32.xlu1 %v1259_v56, %s2238_s21 }
0x12dc   :  { %1262 = vrot.lane.b32.xlu0 %v1258_v58, %s2238_s21 }
0x134d   :  { %v1265_v59 = vpop.permute.xlu1 %1264 }
0x134e   :  { %1269 = vst.msk [vmem:[#allocation3 + $0x68] sm:$0xff] %vm274_vm1, %v1265_v59  ;;  %v1263_v60 = vpop.permute.xlu0 %1262 }
0x134f   :  { %1268 = vst.msk [vmem:[#allocation3 + $0x60] sm:$0xff] %vm274_vm1, %v1263_v60  ;;  %1941 = vmatprep.mubr.msk.f32.mxu0 %vm274_vm1, %v1263_v60 }
0x1350   :  { %1942 = vmatmul.mubr.msk.f32.vlgmr.msra.gmra.mrb[14].mxu0 %vm274_vm1, %v1265_v59 }
0x1355   :  { %v1424_v62 = vld [vmem:[#allocation3 + $0x68] sm:$0xff] }
0x1356   :  { %v1423_v61 = vld [vmem:[#allocation3 + $0x60] sm:$0xff] }
0x1357   :  { %1970 = vmatprep.mubr.msk.f32.mxu1 %vm274_vm1, %v1423_v61 }
0x1358   :  { %1971 = vmatmul.mubr.msk.f32.gmra.mrb[28].mxu1 %vm274_vm1, %v1424_v62 }
0x1423   :  { %v1943_v1 = vpop.f32.mrb[14].mxu0 }
0x1424   :  { %v1352_v14 = vadd.f32 %v1943_v1, %v245_v0  ;;  %v1342_v20 = vpop.f32.mrb[15].mxu0 }
0x1425   :  { %v1351_v2 = vadd.f32 %v1342_v20, %v240_v43 }
0x1426   :  { %2197 = vtanh.f32 %v1352_v14  ;;  %v1727_v25 = vmul.f32 -1.442695, %v1352_v14 }
0x1427   :  { %2199 = vtanh.f32 %v1351_v2  ;;  %v1726_v26 = vmul.f32 -1.442695, %v1351_v2 }
0x1428   :  { %2201 = vpow2.f32 %v1727_v25 }
0x1429   :  { %2203 = vpow2.f32 %v1726_v26 }
0x142b   :  { %v1972_v40 = vpop.f32.mrb[28].mxu1 }
0x142c   :  { %v1618_v4 = vadd.f32 %v1972_v40, %v2468_v33  ;;  %v1612_v5 = vpop.f32.mrb[29].mxu1 }
0x142d   :  { %v1613_v6 = vadd.f32 %v2468_v33, %v1612_v5 }
0x142e   :  { %v1644_v8 = vmax.f32 %v1618_v4, 0.0 }
0x142f   :  { %v1643_v9 = vmax.f32 %v1613_v6, 0.0 }
0x1430   :  { %v2198_v16 = vpop.eup %2197  ;;  %1660 = vst [vmem:[#allocation4 + $0x68] sm:$0xff] %v1644_v8 }
0x1431   :  { %v2200_v17 = vpop.eup %2199  ;;  %1659 = vst [vmem:[#allocation4 + $0x60] sm:$0xff] %v1643_v9  ;;  %1373 = vrot.lane.b32.xlu1 %v2198_v16, %s2239_s6 }
0x1432   :  { %1371 = vrot.lane.b32.xlu0 %v2200_v17, %s2239_s6  ;;  %v2202_v18 = vpop.eup %2201 }
0x1433   :  { %v2204_v12 = vpop.eup %2203  ;;  %v1360_v13 = vadd.f32 1.0, %v2202_v18 }
0x1434   :  { %v1359_v19 = vadd.f32 1.0, %v2204_v12 }
0x1435   :  { %2205 = vrcp.f32 %v1360_v13 }
0x1436   :  { %2207 = vrcp.f32 %v1359_v19 }
0x143f   :  { %v2206_v27 = vpop.eup %2205 }
0x1440   :  { %v2208_v29 = vpop.eup %2207  ;;  %v1368_v32 = vmul.f32 %v2206_v27, %v2637_v52 }
0x1441   :  { %v1367_v34 = vmul.f32 %v2208_v29, %v2639_v54 }
0x14a3   :  { %v1374_v28 = vpop.permute.xlu1 %1373 }
0x14a4   :  { %v1378_v30 = vmul.f32 %v2206_v27, %v1374_v28  ;;  %v1372_v31 = vpop.permute.xlu0 %1371 }
0x14a5   :  { %v1377_v3 = vmul.f32 %v2208_v29, %v1372_v31 }
0x14a6   :  { %1383 = vrot.lane.b32.xlu1 %v1378_v30, %s2238_s21 }
0x14a7   :  { %1381 = vrot.lane.b32.xlu0 %v1377_v3, %s2238_s21 }
0x1518   :  { %v1384_v7 = vpop.permute.xlu1 %1383 }
0x1519   :  { %v1388_v10 = vadd.f32 %v1384_v7, %v1368_v32  ;;  %v1382_v11 = vpop.permute.xlu0 %1381 }
0x151a   :  { %v1387_v35 = vadd.f32 %v1382_v11, %v1367_v34 }
0x151b   :  { %2209 = vtanh.f32 %v1388_v10 }
0x151c   :  { %2211 = vtanh.f32 %v1387_v35 }
0x1525   :  { %v2210_v36 = vpop.eup %2209 }
0x1526   :  { %v2212_v23 = vpop.eup %2211  ;;  %1395 = vrot.lane.b32.xlu1 %v2210_v36, %s2239_s6 }
0x1527   :  { %1393 = vrot.lane.b32.xlu0 %v2212_v23, %s2239_s6  ;;  %s1668_s6 = sshll.u32 %s2240_s3, 4  ;;  %s1669_s6 = int_to_ptr.vmem [resolvable:$true] %s1668_s6 }
0x1528   :  { %p2219_p1 = scmp.lt.s32.totalorder %s1669_s6, %s1669_s6 }
0x1598   :  { %v1396_v15 = vpop.permute.xlu1 %1395 }
0x1599   :  { %v1400_v24 = vmul.f32 %v2206_v27, %v1396_v15  ;;  %v1394_v37 = vpop.permute.xlu0 %1393 }
0x159a   :  { %v1399_v38 = vmul.f32 %v2208_v29, %v1394_v37 }
0x159b   :  { %1405 = vrot.lane.b32.xlu1 %v1400_v24, %s2238_s21 }
0x159c   :  { %1403 = vrot.lane.b32.xlu0 %v1399_v38, %s2238_s21  ;;  %s2214_s21 = scalar_lea.vmem %s1669_s6, 2048 }
0x159d   :  { %p2215_p0 = scmp.ne.s32.totalorder %s1669_s6, %s2214_s21  ;;  %p2220_p2 = scmp.lt.s32.totalorder %s2214_s21, %s2214_s21 }
0x159f   :  { %p2221_p3 = por %p2220_p2, %p2219_p1 }
0x15a1   :  { %p2222_p4 = pnand %p2221_p3, %p2215_p0 }
0x160d   :  { %v1406_v39 = vpop.permute.xlu1 %1405 }
0x160e   :  { %1410 = vst.msk [vmem:[#allocation3 + $0x78] sm:$0xff] %vm274_vm1, %v1406_v39  ;;  %v1404_v41 = vpop.permute.xlu0 %1403 }
0x160f   :  { %1409 = vst.msk [vmem:[#allocation3 + $0x70] sm:$0xff] %vm274_vm1, %v1404_v41 }
0x1615   :  { %v1426_v44 = vld [vmem:[#allocation3 + $0x78] sm:$0xff] }
0x1616   :  { %v1425_v42 = vld [vmem:[#allocation3 + $0x70] sm:$0xff] }
0x1617   :  { %1973 = vmatprep.mubr.msk.f32.mxu1 %vm274_vm1, %v1425_v42 }
0x1618   :  { %1974 = vmatmul.mubr.msk.f32.gmra.mrb[30].mxu1 %vm274_vm1, %v1426_v44 }
0x16eb   :  { %v1975_v45 = vpop.f32.mrb[30].mxu1 }
0x16ec   :  { %v1628_v46 = vadd.f32 %v1975_v45, %v2468_v33  ;;  %v1622_v47 = vpop.f32.mrb[31].mxu1 }
0x16ed   :  { %v1623_v48 = vadd.f32 %v2468_v33, %v1622_v47 }
0x16ee   :  { %v1646_v49 = vmax.f32 %v1628_v46, 0.0 }
0x16ef   :  { %v1645_v50 = vmax.f32 %v1623_v48, 0.0 }
0x16f0   :  { %1662 = vst [vmem:[#allocation4 + $0x78] sm:$0xff] %v1646_v49 }
0x16f1   :  { %1661 = vst [vmem:[#allocation4 + $0x70] sm:$0xff] %v1645_v50 }
0x16f2   :  { %2225 = shalt.err (!%p2222_p4)
}
0x16f3   :  { %s2226_s19 = scalar_lea.hbm %s2696_s8, 2048 }
0x16f4   :  { %p2227_p5 = scmp.ne.s32.totalorder %s2696_s8, %s2226_s19  ;;  %p2230_p6 = scmp.lt.u32.totalorder %s2226_s19, %s2696_s8 }
0x16f6   :  { %p2232_p7 = pnand %p2230_p6, %p2227_p5 }
0x16f8   :  { %2235 = shalt.err (!%p2232_p7)
}
0x16f9   :  { %s2241_s24 = smov 128   ;;  %s2242_s25 = smov 8  }
0x16fa   :  { %1674 = dma.vmem_to_hbm [thread:$0]  %s1669_s6, 2048, %s2696_s8, [#allocation5], %s2241_s24, %s2241_s24, %s2242_s25  }
0x16fb   :  { %2236 = dma.done.wait [#allocation5], 2048  }
0x16fc   :  { %2237 = vsyncadd [#allocation5], 4294965248 }
0x16fd   :  { %1678 = vsyncpa [#allocation5], 1 }

</bundles_post_ra>
